<compile_context>
chip_gen: v6e
topology: v6e:2x2x1
jax: 0.10.0
libtpu: 0.0.40
codegen_flags: <defaults>
</compile_context>

<pallas_src>
import jax
import jax.numpy as jnp
from jax.experimental import pallas as pl
from jax.experimental.pallas import tpu as pltpu  # noqa: F401  (TPU backend module)

# ---- "config" values implied by the module --------------------------------
VOCAB = 20          # len(config.chatbox_ws_input)
EMB = 32            # config.embeddings_dim
HID = 32            # config.hidden_size
NUM_LAYERS = 2      # config.num_layers
PAD = 0             # config.chatbox_ws_input.PAD (token id AND padding_value)


def _round_up(x, m):
    return (x + m - 1) // m * m


VOCAB_PAD = _round_up(VOCAB, 32)    # one-hot block width (tidy 32-lane multiple)


# ---------------------------------------------------------------------------
# Fused kernel: embedding gather + both GRU layers + all time steps, one invocation.
# ---------------------------------------------------------------------------
def _make_encoder_kernel(T, B, H, Vp):
    PADF = float(PAD)

    def kernel(ids_ref, len_ref, w_ref, out_ref, hid_ref):
        ids = ids_ref[...]                                   # (B, T)      int32 token ids
        lens = len_ref[...]                                  # (B, 1)      int32 lengths
        W = w_ref[...]                                       # (Vp+2H, 8H) fused weights

        # ---- hoisted, recurrence-independent prep (off the serial critical path) ----
        iota_v = jax.lax.broadcasted_iota(jnp.int32, (B, Vp), 1)
        onehots = [(ids[:, s:s + 1] == iota_v).astype(jnp.float32) for s in range(T)]

        # Combined [layer0 | layer1] validity mask per wavefront step, one vector
        # compare each.  Layer 0 runs time step s (s < T); layer 1 runs step s-1 (s>=1).
        lens2 = jnp.broadcast_to(lens, (B, 2 * H))
        is_l0 = jax.lax.broadcasted_iota(jnp.int32, (1, 2 * H), 1) < H
        NEVER = T                                            # lens <= T  =>  "> T" never true
        wf_mask = []
        for s in range(T + 1):
            t0 = s if s < T else NEVER
            t1 = s - 1 if s >= 1 else NEVER
            thr = jnp.where(is_l0, jnp.int32(t0), jnp.int32(t1))   # (1, 2H)
            wf_mask.append(lens2 > thr)                            # (B, 2H) bool

        # ---- wavefront recurrence: ONE fused MXU call per serial step ----------------
        h = jnp.zeros((B, 2 * H), jnp.float32)               # [h_layer0 | h_layer1]
        h1_hist = []
        for s in range(T + 1):                               # fully unrolled (T small, static)
            oh = onehots[min(s, T - 1)]                      # any valid one-hot works at s==T
            lhs = jnp.concatenate([oh, h], axis=1)           # (B, Vp + 2H)
            m = jnp.dot(lhs, W, preferred_element_type=jnp.float32)    # (B, 8H)
            # column layout: [r0 | r1 | z0 | z1 | xn0 | xn1 | hn0 | hn1]
            rz = jax.nn.sigmoid(m[:, 0:4 * H])               # both layers' r,z: one EUP slab
            r = rz[:, 0:2 * H]
            z = rz[:, 2 * H:4 * H]
            n = jnp.tanh(m[:, 4 * H:6 * H] + r * m[:, 6 * H:8 * H])   # b_hh[n] pre-folded
            h_new = (1.0 - z) * n + z * h
            h = jnp.where(wf_mask[s], h_new, h)              # freeze past length / inactive layer
            if s >= 1:
                h1_hist.append(h[:, H:2 * H])                # layer-1 state after step s-1

        # ---- outputs: lane-dense batch-first slab, written once ----------------------
        out_ref[...] = jnp.concatenate(
            [jnp.where(lens > t, h1_hist[t], PADF) for t in range(T)], axis=1)
        hid_ref[0] = h[:, 0:H]                               # final layer-0 hidden
        hid_ref[1] = h[:, H:2 * H]                           # final layer-1 hidden

    return kernel


def encoder_gru(ids, lens, w_big, *, T, B, H):
    """ids: (B,T) i32; lens: (B,1) i32; w_big: (Vp+2H, 8H) f32 fused weights.
    Returns (out: (B, T*H) f32, hidden: (NUM_LAYERS, B, H) f32)."""
    Vp = w_big.shape[0] - 2 * H
    return pl.pallas_call(
        _make_encoder_kernel(T, B, H, Vp),
        out_shape=(jax.ShapeDtypeStruct((B, T * H), jnp.float32),
                   jax.ShapeDtypeStruct((NUM_LAYERS, B, H), jnp.float32)),
        # no grid / no specs: whole arrays land in VMEM, single kernel invocation
    )(ids, lens, w_big)


# ---------------------------------------------------------------------------
# Parameter packing (init-time, once): fold embedding + all biases into one matrix.
#   Rows:    [ one-hot token block (Vp) | h_layer0 (H) | h_layer1 (H) ]
#   Columns: [ r0 | r1 | z0 | z1 | xn0 | xn1 | hn0 | hn1 ]   (each H wide)
# ---------------------------------------------------------------------------
def pack_params(params):
    assert NUM_LAYERS == 2, "fused wavefront kernel is specialized to 2 GRU layers"
    H, E, V, Vp = HID, EMB, VOCAB, VOCAB_PAD
    emb = params["embedding"]                                 # (V, E)
    wih0, whh0 = params["wih_t_0"], params["whh_t_0"]         # (E,3H), (H,3H)
    bih0, bhh0 = params["bih_0"], params["bhh_0"]             # (1,3H)
    wih1, whh1 = params["wih_t_1"], params["whh_t_1"]         # (H,3H), (H,3H)
    bih1, bhh1 = params["bih_1"], params["bhh_1"]

    emb_p = jnp.zeros((Vp, E), jnp.float32).at[:V].set(emb)
    g0 = emb_p @ wih0 + bih0                                  # (Vp, 3H), gate order [r|z|n]

    def rep(row):                                             # (1,H) -> (Vp,H)
        return jnp.broadcast_to(row, (Vp, row.shape[-1]))

    oh_block = jnp.concatenate([
        g0[:, 0:H] + bhh0[:, 0:H],                # r0  (gx0_r + b_ih0_r + b_hh0_r)
        rep(bih1[:, 0:H] + bhh1[:, 0:H]),         # r1  biases
        g0[:, H:2 * H] + bhh0[:, H:2 * H],        # z0
        rep(bih1[:, H:2 * H] + bhh1[:, H:2 * H]), # z1  biases
        g0[:, 2 * H:3 * H],                       # xn0 (gx0_n + b_ih0_n)
        rep(bih1[:, 2 * H:3 * H]),                # xn1 bias (b_ih1_n)
        rep(bhh0[:, 2 * H:3 * H]),                # hn0 bias (b_hh0_n)
        rep(bhh1[:, 2 * H:3 * H]),                # hn1 bias (b_hh1_n)
    ], axis=1)                                                # (Vp, 8H)

    zhh = jnp.zeros((H, H), jnp.float32)
    h0_block = jnp.concatenate([
        whh0[:, 0:H], wih1[:, 0:H],               # r0, r1
        whh0[:, H:2 * H], wih1[:, H:2 * H],       # z0, z1
        zhh, wih1[:, 2 * H:3 * H],                # xn0, xn1
        whh0[:, 2 * H:3 * H], zhh,                # hn0, hn1
    ], axis=1)                                                # (H, 8H)

    h1_block = jnp.concatenate([
        zhh, whh1[:, 0:H],
        zhh, whh1[:, H:2 * H],
        zhh, zhh,
        zhh, whh1[:, 2 * H:3 * H],
    ], axis=1)                                                # (H, 8H)

    w_big = jnp.concatenate([oh_block, h0_block, h1_block], axis=0)    # (Vp+2H, 8H)
    return {"w_big": w_big}


# ---------------------------------------------------------------------------
# Encoder wrapper (only free reshapes on the activation path)
# ---------------------------------------------------------------------------
def init_params(key):
    params = {}
    k_emb, key = jax.random.split(key)
    emb = jax.random.normal(k_emb, (VOCAB, EMB), jnp.float32)
    emb = emb.at[PAD].set(0.0)                   # padding_idx row is zero
    params["embedding"] = emb
    bound = 1.0 / jnp.sqrt(jnp.float32(HID))
    for l in range(NUM_LAYERS):
        in_dim = EMB if l == 0 else HID
        k1, k2, k3, k4, key = jax.random.split(key, 5)
        # stored pre-transposed: (in_dim, 3H) / (H, 3H), gate order [r|z|n]
        params[f"wih_t_{l}"] = jax.random.uniform(k1, (in_dim, 3 * HID), jnp.float32, -bound, bound)
        params[f"whh_t_{l}"] = jax.random.uniform(k2, (HID, 3 * HID), jnp.float32, -bound, bound)
        params[f"bih_{l}"] = jax.random.uniform(k3, (1, 3 * HID), jnp.float32, -bound, bound)
        params[f"bhh_{l}"] = jax.random.uniform(k4, (1, 3 * HID), jnp.float32, -bound, bound)
    return params


def encoder_forward(packed, input_ids, input_length):
    """input_ids: (B, T) i32; input_length: (B,) i32 with 0 <= len <= T (no sortedness
    required).  Returns
      out:    (B, T, HID) f32, PAD at padded positions (batch_first, like the module)
      hidden: (NUM_LAYERS, B, HID) f32 (state at each sequence's last valid step)."""
    B, T = input_ids.shape
    ids = input_ids.astype(jnp.int32)
    lens = input_length.astype(jnp.int32).reshape(B, 1)
    out_flat, hidden = encoder_gru(ids, lens, packed["w_big"], T=T, B=B, H=HID)
    out = out_flat.reshape(B, T, HID)            # free reshape: already batch-first, lane-dense
    return out, hidden


# ---------------------------------------------------------------------------
# Pure-JAX reference (same packed-GRU semantics) for a correctness check
# ---------------------------------------------------------------------------
def ref_forward(params, input_ids, input_length):
    embed = jnp.take(params["embedding"], input_ids, axis=0)
    x = embed.astype(jnp.float32)                              # (B, T, E)
    B, T, _ = x.shape
    lengths = input_length.astype(jnp.int32)
    hiddens = []
    for l in range(NUM_LAYERS):
        wih, whh = params[f"wih_t_{l}"], params[f"whh_t_{l}"]
        bih, bhh = params[f"bih_{l}"], params[f"bhh_{l}"]
        h = jnp.zeros((B, HID), jnp.float32)
        outs = []
        for t in range(T):
            gx = x[:, t] @ wih + bih
            gh = h @ whh + bhh
            r = jax.nn.sigmoid(gx[:, :HID] + gh[:, :HID])
            z = jax.nn.sigmoid(gx[:, HID:2 * HID] + gh[:, HID:2 * HID])
            n = jnp.tanh(gx[:, 2 * HID:] + r * gh[:, 2 * HID:])
            h_new = (1.0 - z) * n + z * h
            valid = (t < lengths)[:, None]
            h = jnp.where(valid, h_new, h)
            outs.append(jnp.where(valid, h_new, float(PAD)))
        x = jnp.stack(outs, axis=1)
        hiddens.append(h)
    return x, jnp.stack(hiddens, axis=0)


if __name__ == "__main__":
    key = jax.random.PRNGKey(0)
    params = init_params(key)
    packed = pack_params(params)     # init-time fold: embedding + biases -> one fused weight

    B, T = 2, 8
    k_ids, _ = jax.random.split(jax.random.PRNGKey(0))
    input_length = jnp.array([8, 5], dtype=jnp.int32)
    input_ids = jax.random.randint(k_ids, (B, T), 1, VOCAB, dtype=jnp.int32)
    pos = jnp.arange(T)[None, :]
    input_ids = jnp.where(pos < input_length[:, None], input_ids, PAD)   # PAD past lengths

    fwd = jax.jit(encoder_forward)
    out, hidden = fwd(packed, input_ids, input_length)
    out = jax.block_until_ready(out)
    hidden = jax.block_until_ready(hidden)

    # pad_packed_sequence trims to max(lengths); here max(lengths) == T so no trim needed.
    ref_out, ref_hidden = ref_forward(params, input_ids, input_length)

    assert out.shape == (B, T, HID) and hidden.shape == (NUM_LAYERS, B, HID)
    assert jnp.allclose(out, ref_out, rtol=1e-4, atol=1e-4), "output mismatch vs reference"
    assert jnp.allclose(hidden, ref_hidden, rtol=1e-4, atol=1e-4), "hidden mismatch vs reference"
    print("KERNEL_OK")
</pallas_src>

<mosaic_0001>
module attributes {stable_mosaic.version = 11 : i64} {
  func.func @kernel(%arg0: memref<2x8xi32, #tpu.memory_space<vmem>>, %arg1: memref<2x1xi32, #tpu.memory_space<vmem>>, %arg2: memref<96x256xf32, #tpu.memory_space<vmem>>, %arg3: memref<2x256xf32, #tpu.memory_space<vmem>>, %arg4: memref<2x2x32xf32, #tpu.memory_space<vmem>>) attributes {dimension_semantics = [], scalar_prefetch = 0 : i64, scratch_operands = 0 : i64, tpu.core_type = #tpu.core_type<tc>} {
    %c0 = arith.constant 0 : index
    %c0_0 = arith.constant 0 : index
    %0 = vector.load %arg0[%c0, %c0_0] : memref<2x8xi32, #tpu.memory_space<vmem>>, vector<2x8xi32>
    %c0_1 = arith.constant 0 : index
    %c0_2 = arith.constant 0 : index
    %1 = vector.load %arg1[%c0_1, %c0_2] : memref<2x1xi32, #tpu.memory_space<vmem>>, vector<2x1xi32>
    %c0_3 = arith.constant 0 : index
    %c0_4 = arith.constant 0 : index
    %2 = vector.load %arg2[%c0_3, %c0_4] : memref<96x256xf32, #tpu.memory_space<vmem>>, vector<96x256xf32>
    %3 = tpu.iota {dimensions = array<i32: 1>} : vector<2x32xi32>
    %4 = vector.extract_strided_slice %0 {offsets = [0, 0], sizes = [2, 1], strides = [1, 1]} : vector<2x8xi32> to vector<2x1xi32>
    %5 = vector.broadcast %4 : vector<2x1xi32> to vector<2x32xi32>
    %6 = arith.cmpi eq, %5, %3 : vector<2x32xi32>
    %7 = arith.extui %6 : vector<2x32xi1> to vector<2x32xi32>
    %8 = arith.sitofp %7 : vector<2x32xi32> to vector<2x32xf32>
    %9 = vector.extract_strided_slice %0 {offsets = [0, 1], sizes = [2, 1], strides = [1, 1]} : vector<2x8xi32> to vector<2x1xi32>
    %10 = vector.broadcast %9 : vector<2x1xi32> to vector<2x32xi32>
    %11 = arith.cmpi eq, %10, %3 : vector<2x32xi32>
    %12 = arith.extui %11 : vector<2x32xi1> to vector<2x32xi32>
    %13 = arith.sitofp %12 : vector<2x32xi32> to vector<2x32xf32>
    %14 = vector.extract_strided_slice %0 {offsets = [0, 2], sizes = [2, 1], strides = [1, 1]} : vector<2x8xi32> to vector<2x1xi32>
    %15 = vector.broadcast %14 : vector<2x1xi32> to vector<2x32xi32>
    %16 = arith.cmpi eq, %15, %3 : vector<2x32xi32>
    %17 = arith.extui %16 : vector<2x32xi1> to vector<2x32xi32>
    %18 = arith.sitofp %17 : vector<2x32xi32> to vector<2x32xf32>
    %19 = vector.extract_strided_slice %0 {offsets = [0, 3], sizes = [2, 1], strides = [1, 1]} : vector<2x8xi32> to vector<2x1xi32>
    %20 = vector.broadcast %19 : vector<2x1xi32> to vector<2x32xi32>
    %21 = arith.cmpi eq, %20, %3 : vector<2x32xi32>
    %22 = arith.extui %21 : vector<2x32xi1> to vector<2x32xi32>
    %23 = arith.sitofp %22 : vector<2x32xi32> to vector<2x32xf32>
    %24 = vector.extract_strided_slice %0 {offsets = [0, 4], sizes = [2, 1], strides = [1, 1]} : vector<2x8xi32> to vector<2x1xi32>
    %25 = vector.broadcast %24 : vector<2x1xi32> to vector<2x32xi32>
    %26 = arith.cmpi eq, %25, %3 : vector<2x32xi32>
    %27 = arith.extui %26 : vector<2x32xi1> to vector<2x32xi32>
    %28 = arith.sitofp %27 : vector<2x32xi32> to vector<2x32xf32>
    %29 = vector.extract_strided_slice %0 {offsets = [0, 5], sizes = [2, 1], strides = [1, 1]} : vector<2x8xi32> to vector<2x1xi32>
    %30 = vector.broadcast %29 : vector<2x1xi32> to vector<2x32xi32>
    %31 = arith.cmpi eq, %30, %3 : vector<2x32xi32>
    %32 = arith.extui %31 : vector<2x32xi1> to vector<2x32xi32>
    %33 = arith.sitofp %32 : vector<2x32xi32> to vector<2x32xf32>
    %34 = vector.extract_strided_slice %0 {offsets = [0, 6], sizes = [2, 1], strides = [1, 1]} : vector<2x8xi32> to vector<2x1xi32>
    %35 = vector.broadcast %34 : vector<2x1xi32> to vector<2x32xi32>
    %36 = arith.cmpi eq, %35, %3 : vector<2x32xi32>
    %37 = arith.extui %36 : vector<2x32xi1> to vector<2x32xi32>
    %38 = arith.sitofp %37 : vector<2x32xi32> to vector<2x32xf32>
    %39 = vector.extract_strided_slice %0 {offsets = [0, 7], sizes = [2, 1], strides = [1, 1]} : vector<2x8xi32> to vector<2x1xi32>
    %40 = vector.broadcast %39 : vector<2x1xi32> to vector<2x32xi32>
    %41 = arith.cmpi eq, %40, %3 : vector<2x32xi32>
    %42 = arith.extui %41 : vector<2x32xi1> to vector<2x32xi32>
    %43 = arith.sitofp %42 : vector<2x32xi32> to vector<2x32xf32>
    %44 = vector.shape_cast %1 : vector<2x1xi32> to vector<2x1xi32>
    %45 = vector.broadcast %44 : vector<2x1xi32> to vector<2x64xi32>
    %46 = tpu.iota {dimensions = array<i32: 1>} : vector<1x64xi32>
    %c32_i32 = arith.constant 32 : i32
    %47 = vector.broadcast %c32_i32 : i32 to vector<1x64xi32>
    %48 = arith.cmpi slt, %46, %47 : vector<1x64xi32>
    %c0_i32 = arith.constant 0 : i32
    %c8_i32 = arith.constant 8 : i32
    %49 = vector.broadcast %c0_i32 : i32 to vector<1x64xi32>
    %50 = vector.broadcast %c8_i32 : i32 to vector<1x64xi32>
    %51 = arith.select %48, %49, %50 : vector<1x64xi1>, vector<1x64xi32>
    %52 = vector.broadcast %51 : vector<1x64xi32> to vector<2x64xi32>
    %53 = arith.cmpi sgt, %45, %52 : vector<2x64xi32>
    %c1_i32 = arith.constant 1 : i32
    %c0_i32_5 = arith.constant 0 : i32
    %54 = vector.broadcast %c1_i32 : i32 to vector<1x64xi32>
    %55 = vector.broadcast %c0_i32_5 : i32 to vector<1x64xi32>
    %56 = arith.select %48, %54, %55 : vector<1x64xi1>, vector<1x64xi32>
    %57 = vector.broadcast %56 : vector<1x64xi32> to vector<2x64xi32>
    %58 = arith.cmpi sgt, %45, %57 : vector<2x64xi32>
    %c2_i32 = arith.constant 2 : i32
    %c1_i32_6 = arith.constant 1 : i32
    %59 = vector.broadcast %c2_i32 : i32 to vector<1x64xi32>
    %60 = vector.broadcast %c1_i32_6 : i32 to vector<1x64xi32>
    %61 = arith.select %48, %59, %60 : vector<1x64xi1>, vector<1x64xi32>
    %62 = vector.broadcast %61 : vector<1x64xi32> to vector<2x64xi32>
    %63 = arith.cmpi sgt, %45, %62 : vector<2x64xi32>
    %c3_i32 = arith.constant 3 : i32
    %c2_i32_7 = arith.constant 2 : i32
    %64 = vector.broadcast %c3_i32 : i32 to vector<1x64xi32>
    %65 = vector.broadcast %c2_i32_7 : i32 to vector<1x64xi32>
    %66 = arith.select %48, %64, %65 : vector<1x64xi1>, vector<1x64xi32>
    %67 = vector.broadcast %66 : vector<1x64xi32> to vector<2x64xi32>
    %68 = arith.cmpi sgt, %45, %67 : vector<2x64xi32>
    %c4_i32 = arith.constant 4 : i32
    %c3_i32_8 = arith.constant 3 : i32
    %69 = vector.broadcast %c4_i32 : i32 to vector<1x64xi32>
    %70 = vector.broadcast %c3_i32_8 : i32 to vector<1x64xi32>
    %71 = arith.select %48, %69, %70 : vector<1x64xi1>, vector<1x64xi32>
    %72 = vector.broadcast %71 : vector<1x64xi32> to vector<2x64xi32>
    %73 = arith.cmpi sgt, %45, %72 : vector<2x64xi32>
    %c5_i32 = arith.constant 5 : i32
    %c4_i32_9 = arith.constant 4 : i32
    %74 = vector.broadcast %c5_i32 : i32 to vector<1x64xi32>
    %75 = vector.broadcast %c4_i32_9 : i32 to vector<1x64xi32>
    %76 = arith.select %48, %74, %75 : vector<1x64xi1>, vector<1x64xi32>
    %77 = vector.broadcast %76 : vector<1x64xi32> to vector<2x64xi32>
    %78 = arith.cmpi sgt, %45, %77 : vector<2x64xi32>
    %c6_i32 = arith.constant 6 : i32
    %c5_i32_10 = arith.constant 5 : i32
    %79 = vector.broadcast %c6_i32 : i32 to vector<1x64xi32>
    %80 = vector.broadcast %c5_i32_10 : i32 to vector<1x64xi32>
    %81 = arith.select %48, %79, %80 : vector<1x64xi1>, vector<1x64xi32>
    %82 = vector.broadcast %81 : vector<1x64xi32> to vector<2x64xi32>
    %83 = arith.cmpi sgt, %45, %82 : vector<2x64xi32>
    %c7_i32 = arith.constant 7 : i32
    %c6_i32_11 = arith.constant 6 : i32
    %84 = vector.broadcast %c7_i32 : i32 to vector<1x64xi32>
    %85 = vector.broadcast %c6_i32_11 : i32 to vector<1x64xi32>
    %86 = arith.select %48, %84, %85 : vector<1x64xi1>, vector<1x64xi32>
    %87 = vector.broadcast %86 : vector<1x64xi32> to vector<2x64xi32>
    %88 = arith.cmpi sgt, %45, %87 : vector<2x64xi32>
    %c8_i32_12 = arith.constant 8 : i32
    %c7_i32_13 = arith.constant 7 : i32
    %89 = vector.broadcast %c8_i32_12 : i32 to vector<1x64xi32>
    %90 = vector.broadcast %c7_i32_13 : i32 to vector<1x64xi32>
    %91 = arith.select %48, %89, %90 : vector<1x64xi1>, vector<1x64xi32>
    %92 = vector.broadcast %91 : vector<1x64xi32> to vector<2x64xi32>
    %93 = arith.cmpi sgt, %45, %92 : vector<2x64xi32>
    %cst = arith.constant 0.000000e+00 : f32
    %94 = vector.broadcast %cst : f32 to vector<2x64xf32>
    %95 = tpu.concatenate %8, %94 in 1 : vector<2x32xf32>, vector<2x64xf32> -> vector<2x96xf32>
    %cst_14 = arith.constant dense<0.000000e+00> : vector<2x256xf32>
    %96 = tpu.matmul %95, %2, %cst_14 {dimension_numbers = #tpu.dot_dimension_numbers<[1], [0], [0], [1], [0, 0, 1, 1], [], []>} : vector<2x96xf32>, vector<96x256xf32>, vector<2x256xf32> -> vector<2x256xf32>
    %97 = vector.extract_strided_slice %96 {offsets = [0, 0], sizes = [2, 128], strides = [1, 1]} : vector<2x256xf32> to vector<2x128xf32>
    %98 = arith.negf %97 : vector<2x128xf32>
    %99 = math.exp %98 : vector<2x128xf32>
    %cst_15 = arith.constant 1.000000e+00 : f32
    %100 = vector.broadcast %cst_15 : f32 to vector<2x128xf32>
    %101 = arith.addf %100, %99 : vector<2x128xf32>
    %102 = arith.divf %100, %101 : vector<2x128xf32>
    %103 = vector.extract_strided_slice %102 {offsets = [0, 0], sizes = [2, 64], strides = [1, 1]} : vector<2x128xf32> to vector<2x64xf32>
    %104 = vector.extract_strided_slice %102 {offsets = [0, 64], sizes = [2, 64], strides = [1, 1]} : vector<2x128xf32> to vector<2x64xf32>
    %105 = vector.extract_strided_slice %96 {offsets = [0, 128], sizes = [2, 64], strides = [1, 1]} : vector<2x256xf32> to vector<2x64xf32>
    %106 = vector.extract_strided_slice %96 {offsets = [0, 192], sizes = [2, 64], strides = [1, 1]} : vector<2x256xf32> to vector<2x64xf32>
    %107 = arith.mulf %103, %106 : vector<2x64xf32>
    %108 = arith.addf %105, %107 : vector<2x64xf32>
    %109 = math.tanh %108 : vector<2x64xf32>
    %cst_16 = arith.constant 1.000000e+00 : f32
    %110 = vector.broadcast %cst_16 : f32 to vector<2x64xf32>
    %111 = arith.subf %110, %104 : vector<2x64xf32>
    %112 = arith.mulf %111, %109 : vector<2x64xf32>
    %113 = arith.mulf %104, %94 : vector<2x64xf32>
    %114 = arith.addf %112, %113 : vector<2x64xf32>
    %115 = arith.select %53, %114, %94 : vector<2x64xi1>, vector<2x64xf32>
    %116 = tpu.concatenate %13, %115 in 1 : vector<2x32xf32>, vector<2x64xf32> -> vector<2x96xf32>
    %cst_17 = arith.constant dense<0.000000e+00> : vector<2x256xf32>
    %117 = tpu.matmul %116, %2, %cst_17 {dimension_numbers = #tpu.dot_dimension_numbers<[1], [0], [0], [1], [0, 0, 1, 1], [], []>} : vector<2x96xf32>, vector<96x256xf32>, vector<2x256xf32> -> vector<2x256xf32>
    %118 = vector.extract_strided_slice %117 {offsets = [0, 0], sizes = [2, 128], strides = [1, 1]} : vector<2x256xf32> to vector<2x128xf32>
    %119 = arith.negf %118 : vector<2x128xf32>
    %120 = math.exp %119 : vector<2x128xf32>
    %cst_18 = arith.constant 1.000000e+00 : f32
    %121 = vector.broadcast %cst_18 : f32 to vector<2x128xf32>
    %122 = arith.addf %121, %120 : vector<2x128xf32>
    %123 = arith.divf %121, %122 : vector<2x128xf32>
    %124 = vector.extract_strided_slice %123 {offsets = [0, 0], sizes = [2, 64], strides = [1, 1]} : vector<2x128xf32> to vector<2x64xf32>
    %125 = vector.extract_strided_slice %123 {offsets = [0, 64], sizes = [2, 64], strides = [1, 1]} : vector<2x128xf32> to vector<2x64xf32>
    %126 = vector.extract_strided_slice %117 {offsets = [0, 128], sizes = [2, 64], strides = [1, 1]} : vector<2x256xf32> to vector<2x64xf32>
    %127 = vector.extract_strided_slice %117 {offsets = [0, 192], sizes = [2, 64], strides = [1, 1]} : vector<2x256xf32> to vector<2x64xf32>
    %128 = arith.mulf %124, %127 : vector<2x64xf32>
    %129 = arith.addf %126, %128 : vector<2x64xf32>
    %130 = math.tanh %129 : vector<2x64xf32>
    %cst_19 = arith.constant 1.000000e+00 : f32
    %131 = vector.broadcast %cst_19 : f32 to vector<2x64xf32>
    %132 = arith.subf %131, %125 : vector<2x64xf32>
    %133 = arith.mulf %132, %130 : vector<2x64xf32>
    %134 = arith.mulf %125, %115 : vector<2x64xf32>
    %135 = arith.addf %133, %134 : vector<2x64xf32>
    %136 = arith.select %58, %135, %115 : vector<2x64xi1>, vector<2x64xf32>
    %137 = vector.extract_strided_slice %136 {offsets = [0, 32], sizes = [2, 32], strides = [1, 1]} : vector<2x64xf32> to vector<2x32xf32>
    %138 = tpu.concatenate %18, %136 in 1 : vector<2x32xf32>, vector<2x64xf32> -> vector<2x96xf32>
    %cst_20 = arith.constant dense<0.000000e+00> : vector<2x256xf32>
    %139 = tpu.matmul %138, %2, %cst_20 {dimension_numbers = #tpu.dot_dimension_numbers<[1], [0], [0], [1], [0, 0, 1, 1], [], []>} : vector<2x96xf32>, vector<96x256xf32>, vector<2x256xf32> -> vector<2x256xf32>
    %140 = vector.extract_strided_slice %139 {offsets = [0, 0], sizes = [2, 128], strides = [1, 1]} : vector<2x256xf32> to vector<2x128xf32>
    %141 = arith.negf %140 : vector<2x128xf32>
    %142 = math.exp %141 : vector<2x128xf32>
    %cst_21 = arith.constant 1.000000e+00 : f32
    %143 = vector.broadcast %cst_21 : f32 to vector<2x128xf32>
    %144 = arith.addf %143, %142 : vector<2x128xf32>
    %145 = arith.divf %143, %144 : vector<2x128xf32>
    %146 = vector.extract_strided_slice %145 {offsets = [0, 0], sizes = [2, 64], strides = [1, 1]} : vector<2x128xf32> to vector<2x64xf32>
    %147 = vector.extract_strided_slice %145 {offsets = [0, 64], sizes = [2, 64], strides = [1, 1]} : vector<2x128xf32> to vector<2x64xf32>
    %148 = vector.extract_strided_slice %139 {offsets = [0, 128], sizes = [2, 64], strides = [1, 1]} : vector<2x256xf32> to vector<2x64xf32>
    %149 = vector.extract_strided_slice %139 {offsets = [0, 192], sizes = [2, 64], strides = [1, 1]} : vector<2x256xf32> to vector<2x64xf32>
    %150 = arith.mulf %146, %149 : vector<2x64xf32>
    %151 = arith.addf %148, %150 : vector<2x64xf32>
    %152 = math.tanh %151 : vector<2x64xf32>
    %cst_22 = arith.constant 1.000000e+00 : f32
    %153 = vector.broadcast %cst_22 : f32 to vector<2x64xf32>
    %154 = arith.subf %153, %147 : vector<2x64xf32>
    %155 = arith.mulf %154, %152 : vector<2x64xf32>
    %156 = arith.mulf %147, %136 : vector<2x64xf32>
    %157 = arith.addf %155, %156 : vector<2x64xf32>
    %158 = arith.select %63, %157, %136 : vector<2x64xi1>, vector<2x64xf32>
    %159 = vector.extract_strided_slice %158 {offsets = [0, 32], sizes = [2, 32], strides = [1, 1]} : vector<2x64xf32> to vector<2x32xf32>
    %160 = tpu.concatenate %23, %158 in 1 : vector<2x32xf32>, vector<2x64xf32> -> vector<2x96xf32>
    %cst_23 = arith.constant dense<0.000000e+00> : vector<2x256xf32>
    %161 = tpu.matmul %160, %2, %cst_23 {dimension_numbers = #tpu.dot_dimension_numbers<[1], [0], [0], [1], [0, 0, 1, 1], [], []>} : vector<2x96xf32>, vector<96x256xf32>, vector<2x256xf32> -> vector<2x256xf32>
    %162 = vector.extract_strided_slice %161 {offsets = [0, 0], sizes = [2, 128], strides = [1, 1]} : vector<2x256xf32> to vector<2x128xf32>
    %163 = arith.negf %162 : vector<2x128xf32>
    %164 = math.exp %163 : vector<2x128xf32>
    %cst_24 = arith.constant 1.000000e+00 : f32
    %165 = vector.broadcast %cst_24 : f32 to vector<2x128xf32>
    %166 = arith.addf %165, %164 : vector<2x128xf32>
    %167 = arith.divf %165, %166 : vector<2x128xf32>
    %168 = vector.extract_strided_slice %167 {offsets = [0, 0], sizes = [2, 64], strides = [1, 1]} : vector<2x128xf32> to vector<2x64xf32>
    %169 = vector.extract_strided_slice %167 {offsets = [0, 64], sizes = [2, 64], strides = [1, 1]} : vector<2x128xf32> to vector<2x64xf32>
    %170 = vector.extract_strided_slice %161 {offsets = [0, 128], sizes = [2, 64], strides = [1, 1]} : vector<2x256xf32> to vector<2x64xf32>
    %171 = vector.extract_strided_slice %161 {offsets = [0, 192], sizes = [2, 64], strides = [1, 1]} : vector<2x256xf32> to vector<2x64xf32>
    %172 = arith.mulf %168, %171 : vector<2x64xf32>
    %173 = arith.addf %170, %172 : vector<2x64xf32>
    %174 = math.tanh %173 : vector<2x64xf32>
    %cst_25 = arith.constant 1.000000e+00 : f32
    %175 = vector.broadcast %cst_25 : f32 to vector<2x64xf32>
    %176 = arith.subf %175, %169 : vector<2x64xf32>
    %177 = arith.mulf %176, %174 : vector<2x64xf32>
    %178 = arith.mulf %169, %158 : vector<2x64xf32>
    %179 = arith.addf %177, %178 : vector<2x64xf32>
    %180 = arith.select %68, %179, %158 : vector<2x64xi1>, vector<2x64xf32>
    %181 = vector.extract_strided_slice %180 {offsets = [0, 32], sizes = [2, 32], strides = [1, 1]} : vector<2x64xf32> to vector<2x32xf32>
    %182 = tpu.concatenate %28, %180 in 1 : vector<2x32xf32>, vector<2x64xf32> -> vector<2x96xf32>
    %cst_26 = arith.constant dense<0.000000e+00> : vector<2x256xf32>
    %183 = tpu.matmul %182, %2, %cst_26 {dimension_numbers = #tpu.dot_dimension_numbers<[1], [0], [0], [1], [0, 0, 1, 1], [], []>} : vector<2x96xf32>, vector<96x256xf32>, vector<2x256xf32> -> vector<2x256xf32>
    %184 = vector.extract_strided_slice %183 {offsets = [0, 0], sizes = [2, 128], strides = [1, 1]} : vector<2x256xf32> to vector<2x128xf32>
    %185 = arith.negf %184 : vector<2x128xf32>
    %186 = math.exp %185 : vector<2x128xf32>
    %cst_27 = arith.constant 1.000000e+00 : f32
    %187 = vector.broadcast %cst_27 : f32 to vector<2x128xf32>
    %188 = arith.addf %187, %186 : vector<2x128xf32>
    %189 = arith.divf %187, %188 : vector<2x128xf32>
    %190 = vector.extract_strided_slice %189 {offsets = [0, 0], sizes = [2, 64], strides = [1, 1]} : vector<2x128xf32> to vector<2x64xf32>
    %191 = vector.extract_strided_slice %189 {offsets = [0, 64], sizes = [2, 64], strides = [1, 1]} : vector<2x128xf32> to vector<2x64xf32>
    %192 = vector.extract_strided_slice %183 {offsets = [0, 128], sizes = [2, 64], strides = [1, 1]} : vector<2x256xf32> to vector<2x64xf32>
    %193 = vector.extract_strided_slice %183 {offsets = [0, 192], sizes = [2, 64], strides = [1, 1]} : vector<2x256xf32> to vector<2x64xf32>
    %194 = arith.mulf %190, %193 : vector<2x64xf32>
    %195 = arith.addf %192, %194 : vector<2x64xf32>
    %196 = math.tanh %195 : vector<2x64xf32>
    %cst_28 = arith.constant 1.000000e+00 : f32
    %197 = vector.broadcast %cst_28 : f32 to vector<2x64xf32>
    %198 = arith.subf %197, %191 : vector<2x64xf32>
    %199 = arith.mulf %198, %196 : vector<2x64xf32>
    %200 = arith.mulf %191, %180 : vector<2x64xf32>
    %201 = arith.addf %199, %200 : vector<2x64xf32>
    %202 = arith.select %73, %201, %180 : vector<2x64xi1>, vector<2x64xf32>
    %203 = vector.extract_strided_slice %202 {offsets = [0, 32], sizes = [2, 32], strides = [1, 1]} : vector<2x64xf32> to vector<2x32xf32>
    %204 = tpu.concatenate %33, %202 in 1 : vector<2x32xf32>, vector<2x64xf32> -> vector<2x96xf32>
    %cst_29 = arith.constant dense<0.000000e+00> : vector<2x256xf32>
    %205 = tpu.matmul %204, %2, %cst_29 {dimension_numbers = #tpu.dot_dimension_numbers<[1], [0], [0], [1], [0, 0, 1, 1], [], []>} : vector<2x96xf32>, vector<96x256xf32>, vector<2x256xf32> -> vector<2x256xf32>
    %206 = vector.extract_strided_slice %205 {offsets = [0, 0], sizes = [2, 128], strides = [1, 1]} : vector<2x256xf32> to vector<2x128xf32>
    %207 = arith.negf %206 : vector<2x128xf32>
    %208 = math.exp %207 : vector<2x128xf32>
    %cst_30 = arith.constant 1.000000e+00 : f32
    %209 = vector.broadcast %cst_30 : f32 to vector<2x128xf32>
    %210 = arith.addf %209, %208 : vector<2x128xf32>
    %211 = arith.divf %209, %210 : vector<2x128xf32>
    %212 = vector.extract_strided_slice %211 {offsets = [0, 0], sizes = [2, 64], strides = [1, 1]} : vector<2x128xf32> to vector<2x64xf32>
    %213 = vector.extract_strided_slice %211 {offsets = [0, 64], sizes = [2, 64], strides = [1, 1]} : vector<2x128xf32> to vector<2x64xf32>
    %214 = vector.extract_strided_slice %205 {offsets = [0, 128], sizes = [2, 64], strides = [1, 1]} : vector<2x256xf32> to vector<2x64xf32>
    %215 = vector.extract_strided_slice %205 {offsets = [0, 192], sizes = [2, 64], strides = [1, 1]} : vector<2x256xf32> to vector<2x64xf32>
    %216 = arith.mulf %212, %215 : vector<2x64xf32>
    %217 = arith.addf %214, %216 : vector<2x64xf32>
    %218 = math.tanh %217 : vector<2x64xf32>
    %cst_31 = arith.constant 1.000000e+00 : f32
    %219 = vector.broadcast %cst_31 : f32 to vector<2x64xf32>
    %220 = arith.subf %219, %213 : vector<2x64xf32>
    %221 = arith.mulf %220, %218 : vector<2x64xf32>
    %222 = arith.mulf %213, %202 : vector<2x64xf32>
    %223 = arith.addf %221, %222 : vector<2x64xf32>
    %224 = arith.select %78, %223, %202 : vector<2x64xi1>, vector<2x64xf32>
    %225 = vector.extract_strided_slice %224 {offsets = [0, 32], sizes = [2, 32], strides = [1, 1]} : vector<2x64xf32> to vector<2x32xf32>
    %226 = tpu.concatenate %38, %224 in 1 : vector<2x32xf32>, vector<2x64xf32> -> vector<2x96xf32>
    %cst_32 = arith.constant dense<0.000000e+00> : vector<2x256xf32>
    %227 = tpu.matmul %226, %2, %cst_32 {dimension_numbers = #tpu.dot_dimension_numbers<[1], [0], [0], [1], [0, 0, 1, 1], [], []>} : vector<2x96xf32>, vector<96x256xf32>, vector<2x256xf32> -> vector<2x256xf32>
    %228 = vector.extract_strided_slice %227 {offsets = [0, 0], sizes = [2, 128], strides = [1, 1]} : vector<2x256xf32> to vector<2x128xf32>
    %229 = arith.negf %228 : vector<2x128xf32>
    %230 = math.exp %229 : vector<2x128xf32>
    %cst_33 = arith.constant 1.000000e+00 : f32
    %231 = vector.broadcast %cst_33 : f32 to vector<2x128xf32>
    %232 = arith.addf %231, %230 : vector<2x128xf32>
    %233 = arith.divf %231, %232 : vector<2x128xf32>
    %234 = vector.extract_strided_slice %233 {offsets = [0, 0], sizes = [2, 64], strides = [1, 1]} : vector<2x128xf32> to vector<2x64xf32>
    %235 = vector.extract_strided_slice %233 {offsets = [0, 64], sizes = [2, 64], strides = [1, 1]} : vector<2x128xf32> to vector<2x64xf32>
    %236 = vector.extract_strided_slice %227 {offsets = [0, 128], sizes = [2, 64], strides = [1, 1]} : vector<2x256xf32> to vector<2x64xf32>
    %237 = vector.extract_strided_slice %227 {offsets = [0, 192], sizes = [2, 64], strides = [1, 1]} : vector<2x256xf32> to vector<2x64xf32>
    %238 = arith.mulf %234, %237 : vector<2x64xf32>
    %239 = arith.addf %236, %238 : vector<2x64xf32>
    %240 = math.tanh %239 : vector<2x64xf32>
    %cst_34 = arith.constant 1.000000e+00 : f32
    %241 = vector.broadcast %cst_34 : f32 to vector<2x64xf32>
    %242 = arith.subf %241, %235 : vector<2x64xf32>
    %243 = arith.mulf %242, %240 : vector<2x64xf32>
    %244 = arith.mulf %235, %224 : vector<2x64xf32>
    %245 = arith.addf %243, %244 : vector<2x64xf32>
    %246 = arith.select %83, %245, %224 : vector<2x64xi1>, vector<2x64xf32>
    %247 = vector.extract_strided_slice %246 {offsets = [0, 32], sizes = [2, 32], strides = [1, 1]} : vector<2x64xf32> to vector<2x32xf32>
    %248 = tpu.concatenate %43, %246 in 1 : vector<2x32xf32>, vector<2x64xf32> -> vector<2x96xf32>
    %cst_35 = arith.constant dense<0.000000e+00> : vector<2x256xf32>
    %249 = tpu.matmul %248, %2, %cst_35 {dimension_numbers = #tpu.dot_dimension_numbers<[1], [0], [0], [1], [0, 0, 1, 1], [], []>} : vector<2x96xf32>, vector<96x256xf32>, vector<2x256xf32> -> vector<2x256xf32>
    %250 = vector.extract_strided_slice %249 {offsets = [0, 0], sizes = [2, 128], strides = [1, 1]} : vector<2x256xf32> to vector<2x128xf32>
    %251 = arith.negf %250 : vector<2x128xf32>
    %252 = math.exp %251 : vector<2x128xf32>
    %cst_36 = arith.constant 1.000000e+00 : f32
    %253 = vector.broadcast %cst_36 : f32 to vector<2x128xf32>
    %254 = arith.addf %253, %252 : vector<2x128xf32>
    %255 = arith.divf %253, %254 : vector<2x128xf32>
    %256 = vector.extract_strided_slice %255 {offsets = [0, 0], sizes = [2, 64], strides = [1, 1]} : vector<2x128xf32> to vector<2x64xf32>
    %257 = vector.extract_strided_slice %255 {offsets = [0, 64], sizes = [2, 64], strides = [1, 1]} : vector<2x128xf32> to vector<2x64xf32>
    %258 = vector.extract_strided_slice %249 {offsets = [0, 128], sizes = [2, 64], strides = [1, 1]} : vector<2x256xf32> to vector<2x64xf32>
    %259 = vector.extract_strided_slice %249 {offsets = [0, 192], sizes = [2, 64], strides = [1, 1]} : vector<2x256xf32> to vector<2x64xf32>
    %260 = arith.mulf %256, %259 : vector<2x64xf32>
    %261 = arith.addf %258, %260 : vector<2x64xf32>
    %262 = math.tanh %261 : vector<2x64xf32>
    %cst_37 = arith.constant 1.000000e+00 : f32
    %263 = vector.broadcast %cst_37 : f32 to vector<2x64xf32>
    %264 = arith.subf %263, %257 : vector<2x64xf32>
    %265 = arith.mulf %264, %262 : vector<2x64xf32>
    %266 = arith.mulf %257, %246 : vector<2x64xf32>
    %267 = arith.addf %265, %266 : vector<2x64xf32>
    %268 = arith.select %88, %267, %246 : vector<2x64xi1>, vector<2x64xf32>
    %269 = vector.extract_strided_slice %268 {offsets = [0, 32], sizes = [2, 32], strides = [1, 1]} : vector<2x64xf32> to vector<2x32xf32>
    %270 = tpu.concatenate %43, %268 in 1 : vector<2x32xf32>, vector<2x64xf32> -> vector<2x96xf32>
    %cst_38 = arith.constant dense<0.000000e+00> : vector<2x256xf32>
    %271 = tpu.matmul %270, %2, %cst_38 {dimension_numbers = #tpu.dot_dimension_numbers<[1], [0], [0], [1], [0, 0, 1, 1], [], []>} : vector<2x96xf32>, vector<96x256xf32>, vector<2x256xf32> -> vector<2x256xf32>
    %272 = vector.extract_strided_slice %271 {offsets = [0, 0], sizes = [2, 128], strides = [1, 1]} : vector<2x256xf32> to vector<2x128xf32>
    %273 = arith.negf %272 : vector<2x128xf32>
    %274 = math.exp %273 : vector<2x128xf32>
    %cst_39 = arith.constant 1.000000e+00 : f32
    %275 = vector.broadcast %cst_39 : f32 to vector<2x128xf32>
    %276 = arith.addf %275, %274 : vector<2x128xf32>
    %277 = arith.divf %275, %276 : vector<2x128xf32>
    %278 = vector.extract_strided_slice %277 {offsets = [0, 0], sizes = [2, 64], strides = [1, 1]} : vector<2x128xf32> to vector<2x64xf32>
    %279 = vector.extract_strided_slice %277 {offsets = [0, 64], sizes = [2, 64], strides = [1, 1]} : vector<2x128xf32> to vector<2x64xf32>
    %280 = vector.extract_strided_slice %271 {offsets = [0, 128], sizes = [2, 64], strides = [1, 1]} : vector<2x256xf32> to vector<2x64xf32>
    %281 = vector.extract_strided_slice %271 {offsets = [0, 192], sizes = [2, 64], strides = [1, 1]} : vector<2x256xf32> to vector<2x64xf32>
    %282 = arith.mulf %278, %281 : vector<2x64xf32>
    %283 = arith.addf %280, %282 : vector<2x64xf32>
    %284 = math.tanh %283 : vector<2x64xf32>
    %cst_40 = arith.constant 1.000000e+00 : f32
    %285 = vector.broadcast %cst_40 : f32 to vector<2x64xf32>
    %286 = arith.subf %285, %279 : vector<2x64xf32>
    %287 = arith.mulf %286, %284 : vector<2x64xf32>
    %288 = arith.mulf %279, %268 : vector<2x64xf32>
    %289 = arith.addf %287, %288 : vector<2x64xf32>
    %290 = arith.select %93, %289, %268 : vector<2x64xi1>, vector<2x64xf32>
    %291 = vector.extract_strided_slice %290 {offsets = [0, 32], sizes = [2, 32], strides = [1, 1]} : vector<2x64xf32> to vector<2x32xf32>
    %c0_i32_41 = arith.constant 0 : i32
    %292 = vector.broadcast %c0_i32_41 : i32 to vector<2x1xi32>
    %293 = arith.cmpi sgt, %1, %292 : vector<2x1xi32>
    %cst_42 = arith.constant 0.000000e+00 : f32
    %294 = vector.shape_cast %293 : vector<2x1xi1> to vector<2x1xi1>
    %295 = vector.broadcast %294 : vector<2x1xi1> to vector<2x32xi1>
    %296 = vector.broadcast %cst_42 : f32 to vector<2x32xf32>
    %297 = arith.select %295, %137, %296 : vector<2x32xi1>, vector<2x32xf32>
    %c1_i32_43 = arith.constant 1 : i32
    %298 = vector.broadcast %c1_i32_43 : i32 to vector<2x1xi32>
    %299 = arith.cmpi sgt, %1, %298 : vector<2x1xi32>
    %cst_44 = arith.constant 0.000000e+00 : f32
    %300 = vector.shape_cast %299 : vector<2x1xi1> to vector<2x1xi1>
    %301 = vector.broadcast %300 : vector<2x1xi1> to vector<2x32xi1>
    %302 = vector.broadcast %cst_44 : f32 to vector<2x32xf32>
    %303 = arith.select %301, %159, %302 : vector<2x32xi1>, vector<2x32xf32>
    %c2_i32_45 = arith.constant 2 : i32
    %304 = vector.broadcast %c2_i32_45 : i32 to vector<2x1xi32>
    %305 = arith.cmpi sgt, %1, %304 : vector<2x1xi32>
    %cst_46 = arith.constant 0.000000e+00 : f32
    %306 = vector.shape_cast %305 : vector<2x1xi1> to vector<2x1xi1>
    %307 = vector.broadcast %306 : vector<2x1xi1> to vector<2x32xi1>
    %308 = vector.broadcast %cst_46 : f32 to vector<2x32xf32>
    %309 = arith.select %307, %181, %308 : vector<2x32xi1>, vector<2x32xf32>
    %c3_i32_47 = arith.constant 3 : i32
    %310 = vector.broadcast %c3_i32_47 : i32 to vector<2x1xi32>
    %311 = arith.cmpi sgt, %1, %310 : vector<2x1xi32>
    %cst_48 = arith.constant 0.000000e+00 : f32
    %312 = vector.shape_cast %311 : vector<2x1xi1> to vector<2x1xi1>
    %313 = vector.broadcast %312 : vector<2x1xi1> to vector<2x32xi1>
    %314 = vector.broadcast %cst_48 : f32 to vector<2x32xf32>
    %315 = arith.select %313, %203, %314 : vector<2x32xi1>, vector<2x32xf32>
    %c4_i32_49 = arith.constant 4 : i32
    %316 = vector.broadcast %c4_i32_49 : i32 to vector<2x1xi32>
    %317 = arith.cmpi sgt, %1, %316 : vector<2x1xi32>
    %cst_50 = arith.constant 0.000000e+00 : f32
    %318 = vector.shape_cast %317 : vector<2x1xi1> to vector<2x1xi1>
    %319 = vector.broadcast %318 : vector<2x1xi1> to vector<2x32xi1>
    %320 = vector.broadcast %cst_50 : f32 to vector<2x32xf32>
    %321 = arith.select %319, %225, %320 : vector<2x32xi1>, vector<2x32xf32>
    %c5_i32_51 = arith.constant 5 : i32
    %322 = vector.broadcast %c5_i32_51 : i32 to vector<2x1xi32>
    %323 = arith.cmpi sgt, %1, %322 : vector<2x1xi32>
    %cst_52 = arith.constant 0.000000e+00 : f32
    %324 = vector.shape_cast %323 : vector<2x1xi1> to vector<2x1xi1>
    %325 = vector.broadcast %324 : vector<2x1xi1> to vector<2x32xi1>
    %326 = vector.broadcast %cst_52 : f32 to vector<2x32xf32>
    %327 = arith.select %325, %247, %326 : vector<2x32xi1>, vector<2x32xf32>
    %c6_i32_53 = arith.constant 6 : i32
    %328 = vector.broadcast %c6_i32_53 : i32 to vector<2x1xi32>
    %329 = arith.cmpi sgt, %1, %328 : vector<2x1xi32>
    %cst_54 = arith.constant 0.000000e+00 : f32
    %330 = vector.shape_cast %329 : vector<2x1xi1> to vector<2x1xi1>
    %331 = vector.broadcast %330 : vector<2x1xi1> to vector<2x32xi1>
    %332 = vector.broadcast %cst_54 : f32 to vector<2x32xf32>
    %333 = arith.select %331, %269, %332 : vector<2x32xi1>, vector<2x32xf32>
    %c7_i32_55 = arith.constant 7 : i32
    %334 = vector.broadcast %c7_i32_55 : i32 to vector<2x1xi32>
    %335 = arith.cmpi sgt, %1, %334 : vector<2x1xi32>
    %cst_56 = arith.constant 0.000000e+00 : f32
    %336 = vector.shape_cast %335 : vector<2x1xi1> to vector<2x1xi1>
    %337 = vector.broadcast %336 : vector<2x1xi1> to vector<2x32xi1>
    %338 = vector.broadcast %cst_56 : f32 to vector<2x32xf32>
    %339 = arith.select %337, %291, %338 : vector<2x32xi1>, vector<2x32xf32>
    %340 = tpu.concatenate %297, %303, %309, %315, %321, %327, %333, %339 in 1 : vector<2x32xf32>, vector<2x32xf32>, vector<2x32xf32>, vector<2x32xf32>, vector<2x32xf32>, vector<2x32xf32>, vector<2x32xf32>, vector<2x32xf32> -> vector<2x256xf32>
    %c0_57 = arith.constant 0 : index
    %c0_58 = arith.constant 0 : index
    %341 = vector.load %arg3[%c0_57, %c0_58] : memref<2x256xf32, #tpu.memory_space<vmem>>, vector<2x256xf32>
    tpu.vector_store %arg3[%c0_57, %c0_58], %340 {strides = array<i32>} : memref<2x256xf32, #tpu.memory_space<vmem>>, vector<2x256xf32>,
    %342 = vector.extract_strided_slice %290 {offsets = [0, 0], sizes = [2, 32], strides = [1, 1]} : vector<2x64xf32> to vector<2x32xf32>
    %c0_59 = arith.constant 0 : index
    %c0_60 = arith.constant 0 : index
    %c0_61 = arith.constant 0 : index
    %343 = vector.load %arg4[%c0_59, %c0_60, %c0_61] : memref<2x2x32xf32, #tpu.memory_space<vmem>>, vector<1x2x32xf32>
    %344 = vector.shape_cast %343 : vector<1x2x32xf32> to vector<2x32xf32>
    %345 = vector.shape_cast %342 : vector<2x32xf32> to vector<1x2x32xf32>
    tpu.vector_store %arg4[%c0_59, %c0_60, %c0_61], %345 {strides = array<i32>} : memref<2x2x32xf32, #tpu.memory_space<vmem>>, vector<1x2x32xf32>,
    %346 = vector.extract_strided_slice %290 {offsets = [0, 32], sizes = [2, 32], strides = [1, 1]} : vector<2x64xf32> to vector<2x32xf32>
    %c1 = arith.constant 1 : index
    %c0_62 = arith.constant 0 : index
    %c0_63 = arith.constant 0 : index
    %347 = vector.load %arg4[%c1, %c0_62, %c0_63] : memref<2x2x32xf32, #tpu.memory_space<vmem>>, vector<1x2x32xf32>
    %348 = vector.shape_cast %347 : vector<1x2x32xf32> to vector<2x32xf32>
    %349 = vector.shape_cast %346 : vector<2x32xf32> to vector<1x2x32xf32>
    tpu.vector_store %arg4[%c1, %c0_62, %c0_63], %349 {strides = array<i32>} : memref<2x2x32xf32, #tpu.memory_space<vmem>>, vector<1x2x32xf32>,
    return
  }
}

</mosaic_0001>

<bundles_post_ra>
// kernel: encoder_forward.1
= control target key start
LH: loop header
LB: loop body
LE: loop exit
PB: predicated region body
PF: predicated region fallthrough
CT: control target
= control target key end

     0   :  { %10 = vsyncpa [#allocation3], 0  ;;  %s1931_s0 = inlined_call_operand.vmem [shape: s32[2,8], index: 0, kind: input, shape index: {}]   ;;  %s1932_s1 = inlined_call_operand.vmem [shape: s32[2,1], index: 1, kind: input, shape index: {}]   ;;  %s1933_s2 = inlined_call_operand.hbm [shape: f32[96,256], index: 2, kind: input, shape index: {}]   ;;  %s1934_s3 = inlined_call_operand.vmem [shape: f32[2,256], index: 3, kind: output, shape index: {0}]   ;;  %s1935_s4 = inlined_call_operand.hbm [shape: f32[2,2,32], index: 4, kind: output, shape index: {1}]  }
   0x1   :  { %11 = vsyncpa [#allocation4], 0  ;;  %s1377_s15 = smov [#allocation2]  }
   0x2   :  { %s21_s16 = sshll.u32 %s1377_s15, 4  ;;  %s22_s16 = int_to_ptr.vmem [resolvable:$true] %s21_s16 }
   0x3   :  { %s1341_s17 = scalar_lea.vmem %s22_s16, 3072  ;;  %p1346_p1 = scmp.lt.s32.totalorder %s22_s16, %s22_s16 }
   0x4   :  { %p1342_p0 = scmp.ne.s32.totalorder %s22_s16, %s1341_s17  ;;  %p1347_p2 = scmp.lt.s32.totalorder %s1341_s17, %s1341_s17 }
   0x6   :  { %p1348_p3 = por %p1347_p2, %p1346_p1 }
   0x8   :  { %p1349_p4 = pnand %p1348_p3, %p1342_p0 }
   0xa   :  { %1352 = shalt.err (!%p1349_p4)
}
   0xb   :  { %s1378_s18 = smov 256   ;;  %s1379_s19 = smov 16  }
   0xc   :  { %27 = dma.hbm_to_vmem [thread:$0]  %s1933_s2, 3072, %s22_s16, [#allocation3], %s1378_s18, %s1378_s18, %s1379_s19  }
   0xd   :  { %1373 = dma.done.wait [#allocation3], 3072  }
   0xe   :  { %1374 = vsyncadd [#allocation3], 4294964224  ;;  %v1380_v0 = vmov 0   ;;  %v1381_v1 = vmov 0.0   ;;  %v1430_v2 = vld [vmem:[%s1931_s0] sm:$0x3]  ;;  %v57_v27 = vlaneseq }
   0xf   :  { %1269 = vset.pattern.permute.xlu0 %v1380_v0  ;;  %199 = vmatprep.mubr.f32.mxu0 %v1381_v1  ;;  %v1432_v3 = vld [vmem:[#allocation2 + $0xb8] sm:$0xff]  ;;  %v1434_v4 = vld [vmem:[#allocation2 + $0xb0] sm:$0xff]  ;;  %v1438_v5 = vld [vmem:[#allocation2 + $0xa8] sm:$0xff]  ;;  %vm129_vm0 = vcmask 261120   ;;  %vm131_vm2 = vcmask 785408   ;;  %s1382_s0 = smov 64  }
  0x10   :  { %1270 = vset.pattern.permute.xlu1 %v1380_v0  ;;  %304 = vmatprep.mubr.f32.mxu1 %v1381_v1  ;;  %v1440_v6 = vld [vmem:[#allocation2 + $0xa0] sm:$0xff]  ;;  %v1443_v7 = vld [vmem:[#allocation2 + $0x98] sm:$0xff]  ;;  %v1447_v8 = vld [vmem:[#allocation2 + $0x90] sm:$0xff]  ;;  %v1531_v28 = vand.u32 127, %v57_v27  ;;  %v1383_v43 = vmov 1   ;;  %v1384_v44 = vmov 2  }
  0x11   :  { %60 = vperm.xlu0 %1269, %v1430_v2   ;;  %143 = vmatprep.subr.mxu0 %v1432_v3  ;;  %v1451_v9 = vld [vmem:[#allocation2 + $0x88] sm:$0xff]  ;;  %v1455_v10 = vld [vmem:[#allocation2 + $0x80] sm:$0xff]  ;;  %v1459_v11 = vld [vmem:[#allocation2 + $0x78] sm:$0xff]  ;;  %v1385_v53 = vmov 8   ;;  %v1387_v63 = vmov 3   ;;  %s1392_s25 = smov 96  }
  0x12   :  { %144 = vmatpush1.msra.mxu0 %v1434_v4  ;;  %248 = vmatprep.subr.mxu1 %v1432_v3  ;;  %v1463_v12 = vld [vmem:[#allocation2 + $0x70] sm:$0xff]  ;;  %v1467_v13 = vld [vmem:[#allocation2 + $0x68] sm:$0xff]  ;;  %v1471_v14 = vld [vmem:[#allocation2 + $0x60] sm:$0xff]  ;;  %vm110_vm3 = vcmp.lt.s32.totalorder %v1531_v28, 32  ;;  %s1393_s26 = smov [#allocation5]  }
  0x13   :  { %145 = vmatprep.subr.mxu0 %v1438_v5  ;;  %249 = vmatpush1.msra.mxu1 %v1434_v4  ;;  %v1475_v15 = vld [vmem:[#allocation2 + $0x58] sm:$0xff]  ;;  %v1479_v16 = vld [vmem:[#allocation2 + $0x50] sm:$0xff]  ;;  %v1483_v17 = vld [vmem:[#allocation2 + $0x48] sm:$0xff]  ;;  %v1575_v50 = vsel %vm110_vm3, 3, %v1384_v44  ;;  %v1579_v51 = vsel %vm110_vm3, 2, %v1383_v43  ;;  %v111_v54 = vsel %vm110_vm3, 0, %v1385_v53 }
  0x14   :  { %146 = vmatpush1.msra.mxu0 %v1440_v6  ;;  %250 = vmatprep.subr.mxu1 %v1438_v5  ;;  %v1487_v18 = vld [vmem:[#allocation2 + $0x40] sm:$0xff]  ;;  %v1491_v19 = vld [vmem:[#allocation2 + $0x38] sm:$0xff]  ;;  %v1495_v20 = vld [vmem:[#allocation2 + $0x30] sm:$0xff]  ;;  %s1210_s27 = sshll.u32 %s1393_s26, 4  ;;  %s1211_s27 = int_to_ptr.vmem [resolvable:$true] %s1210_s27 }
  0x15   :  { %147 = vmatprep.subr.mxu0 %v1443_v7  ;;  %251 = vmatpush1.msra.mxu1 %v1440_v6  ;;  %v1499_v21 = vld [vmem:[#allocation2 + $0x28] sm:$0xff]  ;;  %v1503_v22 = vld [vmem:[#allocation2 + $0x20] sm:$0xff]  ;;  %v1507_v23 = vld [vmem:[#allocation2 + $0x18] sm:$0xff]  ;;  %s1353_s28 = scalar_lea.vmem %s1211_s27, 64  ;;  %p1358_p6 = scmp.lt.s32.totalorder %s1211_s27, %s1211_s27 }
  0x16   :  { %148 = vmatpush1.msra.mxu0 %v1447_v8  ;;  %252 = vmatprep.subr.mxu1 %v1443_v7  ;;  %v1511_v24 = vld [vmem:[#allocation2 + $0x10] sm:$0xff]  ;;  %v1515_v25 = vld [vmem:[#allocation2 + $0x8] sm:$0xff]  ;;  %v1519_v26 = vld [vmem:[#allocation2] sm:$0xff]  ;;  %p1354_p5 = scmp.ne.s32.totalorder %s1211_s27, %s1353_s28  ;;  %p1359_p7 = scmp.lt.s32.totalorder %s1353_s28, %s1353_s28 }
  0x17   :  { %149 = vmatprep.subr.mxu0 %v1451_v9  ;;  %253 = vmatpush1.msra.mxu1 %v1447_v8  ;;  %v1567_v42 = vld [vmem:[%s1932_s1] sm:$0x3]  ;;  %s1386_s1 = smov 32  }
  0x18   :  { %150 = vmatpush1.msra.mxu0 %v1455_v10  ;;  %254 = vmatprep.subr.mxu1 %v1451_v9  ;;  %p1360_p8 = por %p1359_p7, %p1358_p6 }
  0x19   :  { %151 = vmatprep.subr.mxu0 %v1459_v11  ;;  %255 = vmatpush1.msra.mxu1 %v1455_v10 }
  0x1a   :  { %152 = vmatpush1.msra.mxu0 %v1463_v12  ;;  %256 = vmatprep.subr.mxu1 %v1459_v11  ;;  %p1361_p9 = pnand %p1360_p8, %p1354_p5 }
  0x1b   :  { %153 = vmatprep.subr.mxu0 %v1467_v13  ;;  %257 = vmatpush1.msra.mxu1 %v1463_v12 }
  0x1c   :  { %154 = vmatpush1.msra.mxu0 %v1471_v14  ;;  %258 = vmatprep.subr.mxu1 %v1467_v13 }
  0x1d   :  { %155 = vmatprep.subr.mxu0 %v1475_v15  ;;  %259 = vmatpush1.msra.mxu1 %v1471_v14 }
  0x1e   :  { %156 = vmatpush1.msra.mxu0 %v1479_v16  ;;  %260 = vmatprep.subr.mxu1 %v1475_v15 }
  0x1f   :  { %157 = vmatprep.subr.mxu0 %v1483_v17  ;;  %261 = vmatpush1.msra.mxu1 %v1479_v16 }
  0x20   :  { %158 = vmatpush1.msra.mxu0 %v1487_v18  ;;  %262 = vmatprep.subr.mxu1 %v1483_v17 }
  0x21   :  { %159 = vmatprep.subr.mxu0 %v1491_v19  ;;  %263 = vmatpush1.msra.mxu1 %v1487_v18 }
  0x22   :  { %160 = vmatpush1.msra.mxu0 %v1495_v20  ;;  %264 = vmatprep.subr.mxu1 %v1491_v19 }
  0x23   :  { %161 = vmatprep.subr.mxu0 %v1499_v21  ;;  %265 = vmatpush1.msra.mxu1 %v1495_v20 }
  0x24   :  { %162 = vmatpush1.msra.mxu0 %v1503_v22  ;;  %266 = vmatprep.subr.mxu1 %v1499_v21 }
  0x25   :  { %163 = vmatprep.subr.mxu0 %v1507_v23  ;;  %267 = vmatpush1.msra.mxu1 %v1503_v22 }
  0x26   :  { %164 = vmatpush1.msra.mxu0 %v1511_v24  ;;  %268 = vmatprep.subr.mxu1 %v1507_v23 }
  0x27   :  { %165 = vmatprep.subr.mxu0 %v1515_v25  ;;  %269 = vmatpush1.msra.mxu1 %v1511_v24 }
  0x28   :  { %166 = vmatpush1.msra.mxu0 %v1519_v26  ;;  %270 = vmatprep.subr.mxu1 %v1515_v25 }
  0x29   :  { %271 = vmatpush1.msra.mxu1 %v1519_v26  ;;  %356 = vmatprep.subr.mxu0 %v1432_v3 }
  0x2a   :  { %464 = vmatprep.subr.mxu1 %v1432_v3 }
  0x8c   :  { %v61_v29 = vpop.permute.xlu0 %60 }
  0x8d   :  { %vm62_vm1 = vcmp.eq.s32.totalorder %v61_v29, %v1531_v28 }
  0x8e   :  { %v1224_v30 = vsel %vm62_vm1, 1.0, %v1381_v1 }
  0x8f   :  { %v130_v31 = vsel %vm129_vm0, %v1224_v30, 0.0 }
  0x90   :  { %1232 = vmatmul.mubr.msk.f32.vlgmr.msra.gmra.mxu0 %vm131_vm2, %v130_v31 }
  0x91   :  { %357 = vmatpush1.msra.mxu0 %v1434_v4  ;;  %412 = vmatprep.mubr.f32.mxu0 %v1381_v1 }
  0x92   :  { %358 = vmatprep.subr.mxu0 %v1438_v5 }
  0x93   :  { %359 = vmatpush1.msra.mxu0 %v1440_v6 }
  0x94   :  { %360 = vmatprep.subr.mxu0 %v1443_v7 }
  0x95   :  { %361 = vmatpush1.msra.mxu0 %v1447_v8 }
  0x96   :  { %362 = vmatprep.subr.mxu0 %v1451_v9 }
  0x97   :  { %363 = vmatpush1.msra.mxu0 %v1455_v10 }
  0x98   :  { %364 = vmatprep.subr.mxu0 %v1459_v11 }
  0x99   :  { %365 = vmatpush1.msra.mxu0 %v1463_v12 }
  0x9a   :  { %366 = vmatprep.subr.mxu0 %v1467_v13 }
  0x9b   :  { %367 = vmatpush1.msra.mxu0 %v1471_v14 }
  0x9c   :  { %368 = vmatprep.subr.mxu0 %v1475_v15 }
  0x9d   :  { %369 = vmatpush1.msra.mxu0 %v1479_v16 }
  0x9e   :  { %370 = vmatprep.subr.mxu0 %v1483_v17 }
  0x9f   :  { %371 = vmatpush1.msra.mxu0 %v1487_v18 }
  0xa0   :  { %372 = vmatprep.subr.mxu0 %v1491_v19 }
  0xa1   :  { %373 = vmatpush1.msra.mxu0 %v1495_v20 }
  0xa2   :  { %374 = vmatprep.subr.mxu0 %v1499_v21 }
  0xa3   :  { %375 = vmatpush1.msra.mxu0 %v1503_v22 }
  0xa4   :  { %376 = vmatprep.subr.mxu0 %v1507_v23 }
  0xa5   :  { %377 = vmatpush1.msra.mxu0 %v1511_v24 }
  0xa6   :  { %378 = vmatprep.subr.mxu0 %v1515_v25 }
  0xa7   :  { %379 = vmatpush1.msra.mxu0 %v1519_v26 }
  0xa8   :  { %572 = vmatprep.subr.mxu0 %v1432_v3 }
 0x150   :  { %v201_v32 = vpop.f32.mrf.mxu0 }
 0x151   :  { %v1233_v34 = vmul.f32 -1.442695, %v201_v32 }
 0x152   :  { %v203_v33 = vpop.f32.mrf.mxu0 }
 0x153   :  { %213 = vrot.lane.b32.xlu0 %v203_v33, %s1382_s0  ;;  %1279 = vpow2.f32 %v1233_v34 }
 0x160   :  { %v1280_v35 = vpop.eup %1279 }
 0x161   :  { %v209_v36 = vadd.f32 1.0, %v1280_v35 }
 0x163   :  { %1281 = vrcp.f32 %v209_v36 }
 0x170   :  { %v1282_v37 = vpop.eup %1281 }
 0x171   :  { %v219_v45 = vsub.f32 1.0, %v1282_v37  ;;  %v225_v47 = vmul.f32 0.0, %v1282_v37 }
 0x1c5   :  { %v214_v38 = vpop.permute.xlu0 %213 }
 0x1c6   :  { %v216_v39 = vmul.f32 %v1282_v37, %v214_v38 }
 0x1c8   :  { %v217_v40 = vadd.f32 %v216_v39, %v203_v33 }
 0x1ca   :  { %1283 = vtanh.f32 %v217_v40 }
 0x1d7   :  { %v1284_v41 = vpop.eup %1283 }
 0x1d8   :  { %221 = vrot.lane.b32.xlu1 %v1284_v41, %s1382_s0 }
 0x1dc   :  { %108 = vperm.xlu1 %1270, %v1567_v42  }
 0x1e0   :  { %1271 = vset.pattern.permute.xlu1 %v1383_v43  ;;  %v113_v43 = vsel %vm110_vm3, 1, %v1380_v0 }
 0x1e1   :  { %66 = vperm.xlu1 %1271, %v1430_v2  }
 0x1e5   :  { %1272 = vset.pattern.permute.xlu1 %v1384_v44 }
 0x24a   :  { %v222_v46 = vpop.permute.xlu1 %221 }
 0x24b   :  { %v224_v48 = vmul.f32 %v222_v46, %v219_v45 }
 0x24d   :  { %v226_v49 = vadd.f32 %v225_v47, %v224_v48 }
 0x24f   :  { %228 = vrot.lane.b32.xlu0 %v226_v49, %s1382_s0 }
 0x257   :  { %v1581_v52 = vpop.permute.xlu1 %108 }
 0x258   :  { %vm118_vm4 = vcmp.gt.s32.totalorder %v1581_v52, %v1575_v50  ;;  %vm116_vm5 = vcmp.gt.s32.totalorder %v1581_v52, %v1579_v51  ;;  %vm112_vm6 = vcmp.gt.s32.totalorder %v1581_v52, %v111_v54  ;;  %vm114_vm8 = vcmp.gt.s32.totalorder %v1581_v52, %v113_v43 }
 0x259   :  { %v1389_v43 = vmov 5  }
 0x25c   :  { %v67_v57 = vpop.permute.xlu1 %66 }
 0x25d   :  { %vm68_vm7 = vcmp.eq.s32.totalorder %v67_v57, %v1531_v28 }
 0x25e   :  { %v1225_v58 = vsel %vm68_vm7, 1.0, %v1381_v1  ;;  %vm1138_vm7 = vcmp.gt.s32.totalorder %v1567_v42, 6 }
 0x2c1   :  { %v229_v55 = vpop.permute.xlu0 %228 }
 0x2c2   :  { %v1590_v56 = vsel %vm112_vm6, %v229_v55, 0.0  ;;  %v1388_v55 = vmov 4   ;;  %vm1124_vm6 = vcmp.gt.s32.totalorder %v1567_v42, 4 }
 0x2c3   :  { %233 = vrot.lane.b32.xlu0 %v1590_v56, %s1386_s1 }
 0x335   :  { %v234_v59 = vpop.permute.xlu0 %233 }
 0x336   :  { %v236_v60 = vsel %vm129_vm0, %v1225_v58, %v234_v59 }
 0x337   :  { %1234 = vmatmul.mubr.msk.f32.vlgmr.msra.gmra.mxu1 %vm131_vm2, %v236_v60 }
 0x338   :  { %465 = vmatpush1.msra.mxu1 %v1434_v4  ;;  %520 = vmatprep.mubr.f32.mxu1 %v1381_v1 }
 0x339   :  { %466 = vmatprep.subr.mxu1 %v1438_v5 }
 0x33a   :  { %467 = vmatpush1.msra.mxu1 %v1440_v6 }
 0x33b   :  { %468 = vmatprep.subr.mxu1 %v1443_v7 }
 0x33c   :  { %469 = vmatpush1.msra.mxu1 %v1447_v8 }
 0x33d   :  { %470 = vmatprep.subr.mxu1 %v1451_v9 }
 0x33e   :  { %471 = vmatpush1.msra.mxu1 %v1455_v10 }
 0x33f   :  { %472 = vmatprep.subr.mxu1 %v1459_v11 }
 0x340   :  { %473 = vmatpush1.msra.mxu1 %v1463_v12 }
 0x341   :  { %474 = vmatprep.subr.mxu1 %v1467_v13 }
 0x342   :  { %475 = vmatpush1.msra.mxu1 %v1471_v14 }
 0x343   :  { %476 = vmatprep.subr.mxu1 %v1475_v15 }
 0x344   :  { %477 = vmatpush1.msra.mxu1 %v1479_v16 }
 0x345   :  { %478 = vmatprep.subr.mxu1 %v1483_v17 }
 0x346   :  { %479 = vmatpush1.msra.mxu1 %v1487_v18 }
 0x347   :  { %480 = vmatprep.subr.mxu1 %v1491_v19 }
 0x348   :  { %481 = vmatpush1.msra.mxu1 %v1495_v20 }
 0x349   :  { %482 = vmatprep.subr.mxu1 %v1499_v21 }
 0x34a   :  { %483 = vmatpush1.msra.mxu1 %v1503_v22 }
 0x34b   :  { %484 = vmatprep.subr.mxu1 %v1507_v23 }
 0x34c   :  { %485 = vmatpush1.msra.mxu1 %v1511_v24 }
 0x34d   :  { %486 = vmatprep.subr.mxu1 %v1515_v25 }
 0x34e   :  { %487 = vmatpush1.msra.mxu1 %v1519_v26 }
 0x34f   :  { %680 = vmatprep.subr.mxu1 %v1432_v3 }
 0x3f7   :  { %v306_v61 = vpop.f32.mrf.mxu1 }
 0x3f8   :  { %v1235_v27 = vmul.f32 -1.442695, %v306_v61 }
 0x3f9   :  { %v308_v62 = vpop.f32.mrf.mxu1 }
 0x3fa   :  { %318 = vrot.lane.b32.xlu1 %v308_v62, %s1382_s0  ;;  %1285 = vpow2.f32 %v1235_v27 }
 0x3fe   :  { %330 = vrot.lane.b32.xlu1 %v1590_v56, %s1382_s0 }
 0x402   :  { %72 = vperm.xlu1 %1272, %v1430_v2  }
 0x406   :  { %1273 = vset.pattern.permute.xlu1 %v1387_v63 }
 0x407   :  { %v1286_v29 = vpop.eup %1285 }
 0x408   :  { %v314_v30 = vadd.f32 1.0, %v1286_v29 }
 0x40a   :  { %1287 = vrcp.f32 %v314_v30 }
 0x417   :  { %v1288_v31 = vpop.eup %1287 }
 0x418   :  { %v324_v37 = vsub.f32 1.0, %v1288_v31 }
 0x46c   :  { %v319_v32 = vpop.permute.xlu1 %318 }
 0x46d   :  { %v321_v33 = vmul.f32 %v1288_v31, %v319_v32 }
 0x46f   :  { %v322_v34 = vadd.f32 %v321_v33, %v308_v62 }
 0x470   :  { %v331_v36 = vpop.permute.xlu1 %330 }
 0x471   :  { %1289 = vtanh.f32 %v322_v34  ;;  %v333_v39 = vmul.f32 %v1288_v31, %v331_v36 }
 0x47d   :  { %v73_v46 = vpop.permute.xlu1 %72 }
 0x47e   :  { %v1290_v35 = vpop.eup %1289  ;;  %vm74_vm9 = vcmp.eq.s32.totalorder %v73_v46, %v1531_v28 }
 0x47f   :  { %326 = vrot.lane.b32.xlu0 %v1290_v35, %s1382_s0  ;;  %v1226_v47 = vsel %vm74_vm9, 1.0, %v1381_v1  ;;  %vm1103_vm9 = vcmp.gt.s32.totalorder %v1567_v42, 1 }
 0x4f1   :  { %v327_v38 = vpop.permute.xlu0 %326 }
 0x4f2   :  { %v329_v40 = vmul.f32 %v327_v38, %v324_v37 }
 0x4f4   :  { %v334_v41 = vadd.f32 %v333_v39, %v329_v40 }
 0x4f6   :  { %336 = vrot.lane.b32.xlu0 %v334_v41, %s1382_s0 }
 0x568   :  { %v337_v44 = vpop.permute.xlu0 %336 }
 0x569   :  { %v1635_v45 = vsel %vm114_vm8, %v337_v44, %v1590_v56  ;;  %vm1145_vm8 = vcmp.gt.s32.totalorder %v1567_v42, 7 }
 0x56a   :  { %341 = vrot.lane.b32.xlu0 %v1635_v45, %s1386_s1 }
 0x5dc   :  { %v342_v48 = vpop.permute.xlu0 %341 }
 0x5dd   :  { %v344_v49 = vsel %vm129_vm0, %v1226_v47, %v342_v48 }
 0x5de   :  { %1236 = vmatmul.mubr.msk.f32.vlgmr.msra.gmra.mxu0 %vm131_vm2, %v344_v49 }
 0x5df   :  { %573 = vmatpush1.msra.mxu0 %v1434_v4  ;;  %628 = vmatprep.mubr.f32.mxu0 %v1381_v1 }
 0x5e0   :  { %574 = vmatprep.subr.mxu0 %v1438_v5 }
 0x5e1   :  { %575 = vmatpush1.msra.mxu0 %v1440_v6 }
 0x5e2   :  { %576 = vmatprep.subr.mxu0 %v1443_v7 }
 0x5e3   :  { %577 = vmatpush1.msra.mxu0 %v1447_v8 }
 0x5e4   :  { %578 = vmatprep.subr.mxu0 %v1451_v9 }
 0x5e5   :  { %579 = vmatpush1.msra.mxu0 %v1455_v10 }
 0x5e6   :  { %580 = vmatprep.subr.mxu0 %v1459_v11 }
 0x5e7   :  { %581 = vmatpush1.msra.mxu0 %v1463_v12 }
 0x5e8   :  { %582 = vmatprep.subr.mxu0 %v1467_v13 }
 0x5e9   :  { %583 = vmatpush1.msra.mxu0 %v1471_v14 }
 0x5ea   :  { %584 = vmatprep.subr.mxu0 %v1475_v15 }
 0x5eb   :  { %585 = vmatpush1.msra.mxu0 %v1479_v16 }
 0x5ec   :  { %586 = vmatprep.subr.mxu0 %v1483_v17 }
 0x5ed   :  { %587 = vmatpush1.msra.mxu0 %v1487_v18 }
 0x5ee   :  { %588 = vmatprep.subr.mxu0 %v1491_v19 }
 0x5ef   :  { %589 = vmatpush1.msra.mxu0 %v1495_v20 }
 0x5f0   :  { %590 = vmatprep.subr.mxu0 %v1499_v21 }
 0x5f1   :  { %591 = vmatpush1.msra.mxu0 %v1503_v22 }
 0x5f2   :  { %592 = vmatprep.subr.mxu0 %v1507_v23 }
 0x5f3   :  { %593 = vmatpush1.msra.mxu0 %v1511_v24 }
 0x5f4   :  { %594 = vmatprep.subr.mxu0 %v1515_v25 }
 0x5f5   :  { %595 = vmatpush1.msra.mxu0 %v1519_v26 }
 0x5f6   :  { %788 = vmatprep.subr.mxu0 %v1432_v3 }
 0x69e   :  { %v414_v53 = vpop.f32.mrf.mxu0 }
 0x69f   :  { %v1237_v56 = vmul.f32 -1.442695, %v414_v53 }
 0x6a0   :  { %v416_v54 = vpop.f32.mrf.mxu0 }
 0x6a1   :  { %426 = vrot.lane.b32.xlu1 %v416_v54, %s1382_s0  ;;  %1291 = vpow2.f32 %v1237_v56 }
 0x6a5   :  { %438 = vrot.lane.b32.xlu1 %v1635_v45, %s1382_s0 }
 0x6a9   :  { %78 = vperm.xlu1 %1273, %v1430_v2  }
 0x6ad   :  { %1274 = vset.pattern.permute.xlu1 %v1388_v55 }
 0x6ae   :  { %v1292_v57 = vpop.eup %1291 }
 0x6af   :  { %v422_v58 = vadd.f32 1.0, %v1292_v57 }
 0x6b1   :  { %1293 = vrcp.f32 %v422_v58 }
 0x6be   :  { %v1294_v59 = vpop.eup %1293 }
 0x6bf   :  { %v432_v30 = vsub.f32 1.0, %v1294_v59 }
 0x713   :  { %v427_v60 = vpop.permute.xlu1 %426 }
 0x714   :  { %v429_v61 = vmul.f32 %v1294_v59, %v427_v60 }
 0x716   :  { %v430_v62 = vadd.f32 %v429_v61, %v416_v54 }
 0x717   :  { %v439_v29 = vpop.permute.xlu1 %438 }
 0x718   :  { %1295 = vtanh.f32 %v430_v62  ;;  %v441_v32 = vmul.f32 %v1294_v59, %v439_v29 }
 0x724   :  { %v79_v37 = vpop.permute.xlu1 %78 }
 0x725   :  { %v1296_v27 = vpop.eup %1295  ;;  %vm80_vm10 = vcmp.eq.s32.totalorder %v79_v37, %v1531_v28 }
 0x726   :  { %434 = vrot.lane.b32.xlu0 %v1296_v27, %s1382_s0  ;;  %v1227_v38 = vsel %vm80_vm10, 1.0, %v1381_v1  ;;  %vm1096_vm10 = vcmp.gt.s32.totalorder %v1567_v42, 0 }
 0x798   :  { %v435_v31 = vpop.permute.xlu0 %434 }
 0x799   :  { %v437_v33 = vmul.f32 %v435_v31, %v432_v30 }
 0x79b   :  { %v442_v34 = vadd.f32 %v441_v32, %v437_v33 }
 0x79d   :  { %444 = vrot.lane.b32.xlu0 %v442_v34, %s1382_s0 }
 0x80f   :  { %v445_v35 = vpop.permute.xlu0 %444 }
 0x810   :  { %v1679_v36 = vsel %vm116_vm5, %v445_v35, %v1635_v45  ;;  %v1390_v35 = vmov 6  }
 0x811   :  { %449 = vrot.lane.b32.xlu0 %v1679_v36, %s1386_s1 }
 0x883   :  { %v450_v39 = vpop.permute.xlu0 %449 }
 0x884   :  { %v452_v40 = vsel %vm129_vm0, %v1227_v38, %v450_v39 }
 0x885   :  { %1238 = vmatmul.mubr.msk.f32.vlgmr.msra.gmra.mxu1 %vm131_vm2, %v452_v40 }
 0x886   :  { %681 = vmatpush1.msra.mxu1 %v1434_v4  ;;  %736 = vmatprep.mubr.f32.mxu1 %v1381_v1 }
 0x887   :  { %682 = vmatprep.subr.mxu1 %v1438_v5 }
 0x888   :  { %683 = vmatpush1.msra.mxu1 %v1440_v6 }
 0x889   :  { %684 = vmatprep.subr.mxu1 %v1443_v7 }
 0x88a   :  { %685 = vmatpush1.msra.mxu1 %v1447_v8 }
 0x88b   :  { %686 = vmatprep.subr.mxu1 %v1451_v9 }
 0x88c   :  { %687 = vmatpush1.msra.mxu1 %v1455_v10 }
 0x88d   :  { %688 = vmatprep.subr.mxu1 %v1459_v11 }
 0x88e   :  { %689 = vmatpush1.msra.mxu1 %v1463_v12 }
 0x88f   :  { %690 = vmatprep.subr.mxu1 %v1467_v13 }
 0x890   :  { %691 = vmatpush1.msra.mxu1 %v1471_v14 }
 0x891   :  { %692 = vmatprep.subr.mxu1 %v1475_v15 }
 0x892   :  { %693 = vmatpush1.msra.mxu1 %v1479_v16 }
 0x893   :  { %694 = vmatprep.subr.mxu1 %v1483_v17 }
 0x894   :  { %695 = vmatpush1.msra.mxu1 %v1487_v18 }
 0x895   :  { %696 = vmatprep.subr.mxu1 %v1491_v19 }
 0x896   :  { %697 = vmatpush1.msra.mxu1 %v1495_v20 }
 0x897   :  { %698 = vmatprep.subr.mxu1 %v1499_v21 }
 0x898   :  { %699 = vmatpush1.msra.mxu1 %v1503_v22 }
 0x899   :  { %700 = vmatprep.subr.mxu1 %v1507_v23 }
 0x89a   :  { %701 = vmatpush1.msra.mxu1 %v1511_v24 }
 0x89b   :  { %702 = vmatprep.subr.mxu1 %v1515_v25 }
 0x89c   :  { %703 = vmatpush1.msra.mxu1 %v1519_v26 }
 0x89d   :  { %896 = vmatprep.subr.mxu1 %v1432_v3 }
 0x945   :  { %v522_v51 = vpop.f32.mrf.mxu1 }
 0x946   :  { %v1239_v44 = vmul.f32 -1.442695, %v522_v51 }
 0x947   :  { %v524_v41 = vpop.f32.mrf.mxu1 }
 0x948   :  { %534 = vrot.lane.b32.xlu1 %v524_v41, %s1382_s0  ;;  %1297 = vpow2.f32 %v1239_v44 }
 0x94c   :  { %546 = vrot.lane.b32.xlu1 %v1679_v36, %s1382_s0 }
 0x950   :  { %84 = vperm.xlu1 %1274, %v1430_v2  }
 0x954   :  { %1275 = vset.pattern.permute.xlu1 %v1389_v43 }
 0x955   :  { %v1298_v46 = vpop.eup %1297 }
 0x956   :  { %v530_v47 = vadd.f32 1.0, %v1298_v46 }
 0x958   :  { %1299 = vrcp.f32 %v530_v47 }
 0x965   :  { %v1300_v48 = vpop.eup %1299 }
 0x966   :  { %v540_v58 = vsub.f32 1.0, %v1300_v48 }
 0x9ba   :  { %v535_v49 = vpop.permute.xlu1 %534 }
 0x9bb   :  { %v537_v53 = vmul.f32 %v1300_v48, %v535_v49 }
 0x9bd   :  { %v538_v54 = vadd.f32 %v537_v53, %v524_v41 }
 0x9be   :  { %v547_v57 = vpop.permute.xlu1 %546 }
 0x9bf   :  { %1301 = vtanh.f32 %v538_v54  ;;  %v549_v60 = vmul.f32 %v1300_v48, %v547_v57 }
 0x9cb   :  { %v85_v30 = vpop.permute.xlu1 %84 }
 0x9cc   :  { %v1302_v56 = vpop.eup %1301  ;;  %vm86_vm11 = vcmp.eq.s32.totalorder %v85_v30, %v1531_v28  ;;  %v1391_v30 = vmov 7  }
 0x9cd   :  { %542 = vrot.lane.b32.xlu0 %v1302_v56, %s1382_s0  ;;  %v1228_v31 = vsel %vm86_vm11, 1.0, %v1381_v1  ;;  %v119_v56 = vsel %vm110_vm3, 4, %v1387_v63  ;;  %vm1110_vm11 = vcmp.gt.s32.totalorder %v1567_v42, 2 }
 0x9ce   :  { %vm120_vm12 = vcmp.gt.s32.totalorder %v1581_v52, %v119_v56 }
 0xa3f   :  { %v543_v59 = vpop.permute.xlu0 %542 }
 0xa40   :  { %v545_v61 = vmul.f32 %v543_v59, %v540_v58 }
 0xa42   :  { %v550_v62 = vadd.f32 %v549_v60, %v545_v61 }
 0xa44   :  { %552 = vrot.lane.b32.xlu0 %v550_v62, %s1382_s0 }
 0xab6   :  { %v553_v27 = vpop.permute.xlu0 %552 }
 0xab7   :  { %v1723_v29 = vsel %vm118_vm4, %v553_v27, %v1679_v36 }
 0xab8   :  { %557 = vrot.lane.b32.xlu0 %v1723_v29, %s1386_s1 }
 0xb2a   :  { %v558_v32 = vpop.permute.xlu0 %557 }
 0xb2b   :  { %v560_v33 = vsel %vm129_vm0, %v1228_v31, %v558_v32 }
 0xb2c   :  { %1240 = vmatmul.mubr.msk.f32.vlgmr.msra.gmra.mxu0 %vm131_vm2, %v560_v33 }
 0xb2d   :  { %789 = vmatpush1.msra.mxu0 %v1434_v4  ;;  %844 = vmatprep.mubr.f32.mxu0 %v1381_v1 }
 0xb2e   :  { %790 = vmatprep.subr.mxu0 %v1438_v5 }
 0xb2f   :  { %791 = vmatpush1.msra.mxu0 %v1440_v6 }
 0xb30   :  { %792 = vmatprep.subr.mxu0 %v1443_v7 }
 0xb31   :  { %793 = vmatpush1.msra.mxu0 %v1447_v8 }
 0xb32   :  { %794 = vmatprep.subr.mxu0 %v1451_v9 }
 0xb33   :  { %795 = vmatpush1.msra.mxu0 %v1455_v10 }
 0xb34   :  { %796 = vmatprep.subr.mxu0 %v1459_v11 }
 0xb35   :  { %797 = vmatpush1.msra.mxu0 %v1463_v12 }
 0xb36   :  { %798 = vmatprep.subr.mxu0 %v1467_v13 }
 0xb37   :  { %799 = vmatpush1.msra.mxu0 %v1471_v14 }
 0xb38   :  { %800 = vmatprep.subr.mxu0 %v1475_v15 }
 0xb39   :  { %801 = vmatpush1.msra.mxu0 %v1479_v16 }
 0xb3a   :  { %802 = vmatprep.subr.mxu0 %v1483_v17 }
 0xb3b   :  { %803 = vmatpush1.msra.mxu0 %v1487_v18 }
 0xb3c   :  { %804 = vmatprep.subr.mxu0 %v1491_v19 }
 0xb3d   :  { %805 = vmatpush1.msra.mxu0 %v1495_v20 }
 0xb3e   :  { %806 = vmatprep.subr.mxu0 %v1499_v21 }
 0xb3f   :  { %807 = vmatpush1.msra.mxu0 %v1503_v22 }
 0xb40   :  { %808 = vmatprep.subr.mxu0 %v1507_v23 }
 0xb41   :  { %809 = vmatpush1.msra.mxu0 %v1511_v24 }
 0xb42   :  { %810 = vmatprep.subr.mxu0 %v1515_v25 }
 0xb43   :  { %811 = vmatpush1.msra.mxu0 %v1519_v26 }
 0xb44   :  { %1004 = vmatprep.subr.mxu0 %v1432_v3 }
 0xbec   :  { %v630_v50 = vpop.f32.mrf.mxu0 }
 0xbed   :  { %v1241_v37 = vmul.f32 -1.442695, %v630_v50 }
 0xbee   :  { %v632_v34 = vpop.f32.mrf.mxu0 }
 0xbef   :  { %642 = vrot.lane.b32.xlu1 %v632_v34, %s1382_s0  ;;  %1303 = vpow2.f32 %v1241_v37 }
 0xbf3   :  { %654 = vrot.lane.b32.xlu1 %v1723_v29, %s1382_s0 }
 0xbf7   :  { %90 = vperm.xlu1 %1275, %v1430_v2  }
 0xbfb   :  { %1276 = vset.pattern.permute.xlu1 %v1390_v35 }
 0xbfc   :  { %v1304_v38 = vpop.eup %1303 }
 0xbfd   :  { %v638_v39 = vadd.f32 1.0, %v1304_v38 }
 0xbff   :  { %1305 = vrcp.f32 %v638_v39 }
 0xc0c   :  { %v1306_v40 = vpop.eup %1305 }
 0xc0d   :  { %v648_v47 = vsub.f32 1.0, %v1306_v40 }
 0xc61   :  { %v643_v51 = vpop.permute.xlu1 %642 }
 0xc62   :  { %v645_v3 = vmul.f32 %v1306_v40, %v643_v51 }
 0xc64   :  { %v646_v41 = vadd.f32 %v645_v3, %v632_v34 }
 0xc65   :  { %v655_v46 = vpop.permute.xlu1 %654 }
 0xc66   :  { %1307 = vtanh.f32 %v646_v41  ;;  %v657_v49 = vmul.f32 %v1306_v40, %v655_v46 }
 0xc72   :  { %v91_v59 = vpop.permute.xlu1 %90 }
 0xc73   :  { %v1308_v44 = vpop.eup %1307  ;;  %vm92_vm13 = vcmp.eq.s32.totalorder %v91_v59, %v1531_v28 }
 0xc74   :  { %650 = vrot.lane.b32.xlu0 %v1308_v44, %s1382_s0  ;;  %v1229_v60 = vsel %vm92_vm13, 1.0, %v1381_v1  ;;  %vm1131_vm13 = vcmp.gt.s32.totalorder %v1567_v42, 5 }
 0xce6   :  { %v651_v48 = vpop.permute.xlu0 %650 }
 0xce7   :  { %v653_v53 = vmul.f32 %v651_v48, %v648_v47  ;;  %v121_v47 = vsel %vm110_vm3, 5, %v1388_v55 }
 0xce8   :  { %vm122_vm14 = vcmp.gt.s32.totalorder %v1581_v52, %v121_v47  ;;  %v1146_v47 = vsel %vm1145_vm8, 1, %v1380_v0 }
 0xce9   :  { %v658_v54 = vadd.f32 %v657_v49, %v653_v53 }
 0xceb   :  { %660 = vrot.lane.b32.xlu0 %v658_v54, %s1382_s0 }
 0xd5d   :  { %v661_v57 = vpop.permute.xlu0 %660 }
 0xd5e   :  { %v1768_v58 = vsel %vm120_vm12, %v661_v57, %v1723_v29  ;;  %vm1117_vm12 = vcmp.gt.s32.totalorder %v1567_v42, 3 }
 0xd5f   :  { %665 = vrot.lane.b32.xlu0 %v1768_v58, %s1386_s1 }
 0xdd1   :  { %v666_v61 = vpop.permute.xlu0 %665 }
 0xdd2   :  { %v668_v62 = vsel %vm129_vm0, %v1229_v60, %v666_v61 }
 0xdd3   :  { %1242 = vmatmul.mubr.msk.f32.vlgmr.msra.gmra.mxu1 %vm131_vm2, %v668_v62 }
 0xdd4   :  { %897 = vmatpush1.msra.mxu1 %v1434_v4  ;;  %952 = vmatprep.mubr.f32.mxu1 %v1381_v1 }
 0xdd5   :  { %898 = vmatprep.subr.mxu1 %v1438_v5 }
 0xdd6   :  { %899 = vmatpush1.msra.mxu1 %v1440_v6 }
 0xdd7   :  { %900 = vmatprep.subr.mxu1 %v1443_v7 }
 0xdd8   :  { %901 = vmatpush1.msra.mxu1 %v1447_v8 }
 0xdd9   :  { %902 = vmatprep.subr.mxu1 %v1451_v9 }
 0xdda   :  { %903 = vmatpush1.msra.mxu1 %v1455_v10 }
 0xddb   :  { %904 = vmatprep.subr.mxu1 %v1459_v11 }
 0xddc   :  { %905 = vmatpush1.msra.mxu1 %v1463_v12 }
 0xddd   :  { %906 = vmatprep.subr.mxu1 %v1467_v13 }
 0xdde   :  { %907 = vmatpush1.msra.mxu1 %v1471_v14 }
 0xddf   :  { %908 = vmatprep.subr.mxu1 %v1475_v15 }
 0xde0   :  { %909 = vmatpush1.msra.mxu1 %v1479_v16 }
 0xde1   :  { %910 = vmatprep.subr.mxu1 %v1483_v17 }
 0xde2   :  { %911 = vmatpush1.msra.mxu1 %v1487_v18 }
 0xde3   :  { %912 = vmatprep.subr.mxu1 %v1491_v19 }
 0xde4   :  { %913 = vmatpush1.msra.mxu1 %v1495_v20 }
 0xde5   :  { %914 = vmatprep.subr.mxu1 %v1499_v21 }
 0xde6   :  { %915 = vmatpush1.msra.mxu1 %v1503_v22 }
 0xde7   :  { %916 = vmatprep.subr.mxu1 %v1507_v23 }
 0xde8   :  { %917 = vmatpush1.msra.mxu1 %v1511_v24 }
 0xde9   :  { %918 = vmatprep.subr.mxu1 %v1515_v25 }
 0xdea   :  { %919 = vmatpush1.msra.mxu1 %v1519_v26 }
 0xe93   :  { %v738_v63 = vpop.f32.mrf.mxu1 }
 0xe94   :  { %v1243_v31 = vmul.f32 -1.442695, %v738_v63 }
 0xe95   :  { %v740_v27 = vpop.f32.mrf.mxu1 }
 0xe96   :  { %750 = vrot.lane.b32.xlu1 %v740_v27, %s1382_s0  ;;  %1309 = vpow2.f32 %v1243_v31 }
 0xe9a   :  { %762 = vrot.lane.b32.xlu1 %v1768_v58, %s1382_s0 }
 0xe9e   :  { %96 = vperm.xlu1 %1276, %v1430_v2  }
 0xea2   :  { %1277 = vset.pattern.permute.xlu1 %v1391_v30 }
 0xea3   :  { %v1310_v32 = vpop.eup %1309 }
 0xea4   :  { %v746_v33 = vadd.f32 1.0, %v1310_v32 }
 0xea6   :  { %1311 = vrcp.f32 %v746_v33 }
 0xeb3   :  { %v1312_v50 = vpop.eup %1311 }
 0xeb4   :  { %v756_v51 = vsub.f32 1.0, %v1312_v50 }
 0xf08   :  { %v751_v34 = vpop.permute.xlu1 %750 }
 0xf09   :  { %v753_v37 = vmul.f32 %v1312_v50, %v751_v34 }
 0xf0b   :  { %v754_v38 = vadd.f32 %v753_v37, %v740_v27 }
 0xf0c   :  { %v763_v40 = vpop.permute.xlu1 %762 }
 0xf0d   :  { %1313 = vtanh.f32 %v754_v38  ;;  %v765_v41 = vmul.f32 %v1312_v50, %v763_v40  ;;  %v125_v38 = vsel %vm110_vm3, 7, %v1390_v35  ;;  %v1125_v35 = vsel %vm1124_vm6, 1, %v1380_v0 }
 0xf0e   :  { %vm126_vm5 = vcmp.gt.s32.totalorder %v1581_v52, %v125_v38  ;;  %vm1195_vm6 = vcmask 254976  }
 0xf19   :  { %v97_v53 = vpop.permute.xlu1 %96 }
 0xf1a   :  { %v1314_v39 = vpop.eup %1313  ;;  %vm98_vm15 = vcmp.eq.s32.totalorder %v97_v53, %v1531_v28 }
 0xf1b   :  { %758 = vrot.lane.b32.xlu0 %v1314_v39, %s1382_s0  ;;  %v1230_v54 = vsel %vm98_vm15, 1.0, %v1381_v1 }
 0xf8d   :  { %v759_v3 = vpop.permute.xlu0 %758 }
 0xf8e   :  { %v761_v44 = vmul.f32 %v759_v3, %v756_v51 }
 0xf90   :  { %v766_v46 = vadd.f32 %v765_v41, %v761_v44 }
 0xf92   :  { %768 = vrot.lane.b32.xlu0 %v766_v46, %s1382_s0  ;;  %v1139_v46 = vsel %vm1138_vm7, 1, %v1380_v0 }
0x1004   :  { %v769_v48 = vpop.permute.xlu0 %768 }
0x1005   :  { %v1812_v49 = vsel %vm122_vm14, %v769_v48, %v1768_v58  ;;  %v1104_v48 = vsel %vm1103_vm9, 1, %v1380_v0 }
0x1006   :  { %773 = vrot.lane.b32.xlu0 %v1812_v49, %s1386_s1 }
0x1078   :  { %v774_v56 = vpop.permute.xlu0 %773 }
0x1079   :  { %v776_v57 = vsel %vm129_vm0, %v1230_v54, %v774_v56 }
0x107a   :  { %1244 = vmatmul.mubr.msk.f32.vlgmr.msra.gmra.mxu0 %vm131_vm2, %v776_v57 }
0x107b   :  { %1005 = vmatpush1.msra.mxu0 %v1434_v4  ;;  %1060 = vmatprep.mubr.f32.mxu0 %v1381_v1 }
0x107c   :  { %1006 = vmatprep.subr.mxu0 %v1438_v5 }
0x107d   :  { %1007 = vmatpush1.msra.mxu0 %v1440_v6 }
0x107e   :  { %1008 = vmatprep.subr.mxu0 %v1443_v7 }
0x107f   :  { %1009 = vmatpush1.msra.mxu0 %v1447_v8 }
0x1080   :  { %1010 = vmatprep.subr.mxu0 %v1451_v9 }
0x1081   :  { %1011 = vmatpush1.msra.mxu0 %v1455_v10 }
0x1082   :  { %1012 = vmatprep.subr.mxu0 %v1459_v11 }
0x1083   :  { %1013 = vmatpush1.msra.mxu0 %v1463_v12 }
0x1084   :  { %1014 = vmatprep.subr.mxu0 %v1467_v13 }
0x1085   :  { %1015 = vmatpush1.msra.mxu0 %v1471_v14 }
0x1086   :  { %1016 = vmatprep.subr.mxu0 %v1475_v15 }
0x1087   :  { %1017 = vmatpush1.msra.mxu0 %v1479_v16 }
0x1088   :  { %1018 = vmatprep.subr.mxu0 %v1483_v17 }
0x1089   :  { %1019 = vmatpush1.msra.mxu0 %v1487_v18 }
0x108a   :  { %1020 = vmatprep.subr.mxu0 %v1491_v19  ;;  %v123_v19 = vsel %vm110_vm3, 6, %v1389_v43 }
0x108b   :  { %1021 = vmatpush1.msra.mxu0 %v1495_v20  ;;  %vm124_vm1 = vcmp.gt.s32.totalorder %v1581_v52, %v123_v19 }
0x108c   :  { %1022 = vmatprep.subr.mxu0 %v1499_v21 }
0x108d   :  { %1023 = vmatpush1.msra.mxu0 %v1503_v22 }
0x108e   :  { %1024 = vmatprep.subr.mxu0 %v1507_v23 }
0x108f   :  { %1025 = vmatpush1.msra.mxu0 %v1511_v24 }
0x1090   :  { %1026 = vmatprep.subr.mxu0 %v1515_v25 }
0x1091   :  { %1027 = vmatpush1.msra.mxu0 %v1519_v26 }
0x113a   :  { %v846_v4 = vpop.f32.mrf.mxu0 }
0x113b   :  { %v1245_v6 = vmul.f32 -1.442695, %v846_v4 }
0x113c   :  { %v848_v5 = vpop.f32.mrf.mxu0 }
0x113d   :  { %858 = vrot.lane.b32.xlu1 %v848_v5, %s1382_s0  ;;  %1315 = vpow2.f32 %v1245_v6 }
0x1141   :  { %870 = vrot.lane.b32.xlu1 %v1812_v49, %s1382_s0 }
0x1145   :  { %102 = vperm.xlu1 %1277, %v1430_v2  }
0x1149   :  { %1278 = vset.pattern.permute.xlu1 %v1380_v0 }
0x114a   :  { %v1316_v7 = vpop.eup %1315 }
0x114b   :  { %v854_v8 = vadd.f32 1.0, %v1316_v7 }
0x114d   :  { %1317 = vrcp.f32 %v854_v8  ;;  %v1097_v8 = vsel %vm1096_vm10, 1, %v1380_v0  ;;  %vm1177_vm10 = vcmask 523264  }
0x115a   :  { %v1318_v9 = vpop.eup %1317 }
0x115b   :  { %v864_v15 = vsub.f32 1.0, %v1318_v9 }
0x11af   :  { %v859_v10 = vpop.permute.xlu1 %858 }
0x11b0   :  { %v861_v11 = vmul.f32 %v1318_v9, %v859_v10  ;;  %v1118_v10 = vsel %vm1117_vm12, 1, %v1380_v0 }
0x11b2   :  { %v862_v12 = vadd.f32 %v861_v11, %v848_v5 }
0x11b3   :  { %v871_v14 = vpop.permute.xlu1 %870 }
0x11b4   :  { %1319 = vtanh.f32 %v862_v12  ;;  %v873_v17 = vmul.f32 %v1318_v9, %v871_v14  ;;  %v1111_v9 = vsel %vm1110_vm11, 1, %v1380_v0 }
0x11c0   :  { %v103_v22 = vpop.permute.xlu1 %102 }
0x11c1   :  { %v1320_v13 = vpop.eup %1319  ;;  %vm104_vm4 = vcmp.eq.s32.totalorder %v103_v22, %v1531_v28 }
0x11c2   :  { %866 = vrot.lane.b32.xlu0 %v1320_v13, %s1382_s0  ;;  %v1231_v23 = vsel %vm104_vm4, 1.0, %v1381_v1 }
0x1234   :  { %v867_v16 = vpop.permute.xlu0 %866 }
0x1235   :  { %v869_v2 = vmul.f32 %v867_v16, %v864_v15 }
0x1237   :  { %v874_v18 = vadd.f32 %v873_v17, %v869_v2  ;;  %v1132_v2 = vsel %vm1131_vm13, 1, %v1380_v0 }
0x1239   :  { %876 = vrot.lane.b32.xlu0 %v874_v18, %s1382_s0 }
0x12ab   :  { %v877_v20 = vpop.permute.xlu0 %876 }
0x12ac   :  { %v1856_v21 = vsel %vm124_vm1, %v877_v20, %v1812_v49 }
0x12ad   :  { %881 = vrot.lane.b32.xlu0 %v1856_v21, %s1386_s1 }
0x131f   :  { %v882_v24 = vpop.permute.xlu0 %881 }
0x1320   :  { %v884_v25 = vsel %vm129_vm0, %v1231_v23, %v882_v24 }
0x1321   :  { %1246 = vmatmul.mubr.msk.f32.vlgmr.msra.gmra.mxu1 %vm131_vm2, %v884_v25 }
0x13e1   :  { %v954_v26 = vpop.f32.mrf.mxu1 }
0x13e2   :  { %v1247_v43 = vmul.f32 -1.442695, %v954_v26 }
0x13e3   :  { %v956_v55 = vpop.f32.mrf.mxu1 }
0x13e4   :  { %966 = vrot.lane.b32.xlu1 %v956_v55, %s1382_s0  ;;  %1321 = vpow2.f32 %v1247_v43 }
0x13e8   :  { %978 = vrot.lane.b32.xlu1 %v1856_v21, %s1382_s0 }
0x13f1   :  { %v1322_v59 = vpop.eup %1321 }
0x13f2   :  { %v962_v60 = vadd.f32 1.0, %v1322_v59 }
0x13f4   :  { %1323 = vrcp.f32 %v962_v60 }
0x1401   :  { %v1324_v61 = vpop.eup %1323 }
0x1402   :  { %v972_v32 = vsub.f32 1.0, %v1324_v61 }
0x1456   :  { %v967_v62 = vpop.permute.xlu1 %966 }
0x1457   :  { %v969_v1 = vmul.f32 %v1324_v61, %v967_v62 }
0x1459   :  { %v970_v63 = vadd.f32 %v969_v1, %v956_v55 }
0x145a   :  { %v979_v31 = vpop.permute.xlu1 %978 }
0x145b   :  { %1325 = vtanh.f32 %v970_v63  ;;  %v981_v50 = vmul.f32 %v1324_v61, %v979_v31 }
0x1468   :  { %v1326_v27 = vpop.eup %1325 }
0x1469   :  { %974 = vrot.lane.b32.xlu0 %v1326_v27, %s1382_s0 }
0x14db   :  { %v975_v33 = vpop.permute.xlu0 %974 }
0x14dc   :  { %v977_v34 = vmul.f32 %v975_v33, %v972_v32 }
0x14de   :  { %v982_v37 = vadd.f32 %v981_v50, %v977_v34 }
0x14e0   :  { %984 = vrot.lane.b32.xlu0 %v982_v37, %s1382_s0 }
0x1552   :  { %v985_v39 = vpop.permute.xlu0 %984 }
0x1553   :  { %v1874_v40 = vsel %vm126_vm5, %v985_v39, %v1856_v21 }
0x1554   :  { %989 = vrot.lane.b32.xlu1 %v1874_v40, %s1386_s1 }
0x15c6   :  { %v990_v51 = vpop.permute.xlu1 %989 }
0x15c7   :  { %v992_v3 = vsel %vm129_vm0, %v1231_v23, %v990_v51 }
0x15c8   :  { %1248 = vmatmul.mubr.msk.f32.vlgmr.msra.gmra.mxu0 %vm131_vm2, %v992_v3 }
0x1688   :  { %v1062_v41 = vpop.f32.mrf.mxu0 }
0x1689   :  { %v1249_v53 = vmul.f32 -1.442695, %v1062_v41 }
0x168a   :  { %v1064_v44 = vpop.f32.mrf.mxu0 }
0x168b   :  { %1074 = vrot.lane.b32.xlu0 %v1064_v44, %s1382_s0  ;;  %1327 = vpow2.f32 %v1249_v53 }
0x168f   :  { %1086 = vrot.lane.b32.xlu0 %v1874_v40, %s1382_s0 }
0x1693   :  { %1127 = vperm.xlu0 %1269, %v1125_v35  }
0x1697   :  { %1141 = vperm.xlu0 %1269, %v1139_v46  }
0x1698   :  { %v1328_v54 = vpop.eup %1327 }
0x1699   :  { %v1070_v56 = vadd.f32 1.0, %v1328_v54 }
0x169b   :  { %1148 = vperm.xlu0 %1269, %v1146_v47   ;;  %1329 = vrcp.f32 %v1070_v56 }
0x169f   :  { %1106 = vperm.xlu0 %1269, %v1104_v48  }
0x16a8   :  { %v1330_v57 = vpop.eup %1329 }
0x16a9   :  { %v1080_v12 = vsub.f32 1.0, %v1330_v57 }
0x16fd   :  { %v1075_v4 = vpop.permute.xlu0 %1074 }
0x16fe   :  { %v1077_v5 = vmul.f32 %v1330_v57, %v1075_v4 }
0x1700   :  { %v1078_v6 = vadd.f32 %v1077_v5, %v1064_v44 }
0x1701   :  { %v1087_v11 = vpop.permute.xlu0 %1086 }
0x1702   :  { %1331 = vtanh.f32 %v1078_v6  ;;  %v1089_v14 = vmul.f32 %v1330_v57, %v1087_v11 }
0x170e   :  { %v1128_v17 = vpop.permute.xlu0 %1127 }
0x170f   :  { %v1332_v7 = vpop.eup %1331  ;;  %vm1129_vm14 = vcmp.eq.s32.totalorder %v1128_v17, 1 }
0x1710   :  { %1082 = vrot.lane.b32.xlu1 %v1332_v7, %s1382_s0  ;;  %v1130_v19 = vsel %vm1129_vm14, %v1812_v49, 0.0 }
0x1712   :  { %v1142_v18 = vpop.permute.xlu0 %1141 }
0x1713   :  { %vm1143_vm15 = vcmp.eq.s32.totalorder %v1142_v18, 1 }
0x1714   :  { %1099 = vperm.xlu1 %1278, %v1097_v8   ;;  %v1144_v23 = vsel %vm1143_vm15, %v1874_v40, 0.0 }
0x1716   :  { %v1149_v25 = vpop.permute.xlu0 %1148 }
0x1717   :  { %vm1150_vm8 = vcmp.eq.s32.totalorder %v1149_v25, 1 }
0x1718   :  { %1113 = vperm.xlu1 %1278, %v1111_v9  }
0x171c   :  { %1120 = vperm.xlu1 %1278, %v1118_v10  }
0x1782   :  { %v1083_v13 = vpop.permute.xlu1 %1082 }
0x1783   :  { %v1085_v15 = vmul.f32 %v1083_v13, %v1080_v12 }
0x1785   :  { %v1090_v16 = vadd.f32 %v1089_v14, %v1085_v15 }
0x1787   :  { %1092 = vrot.lane.b32.xlu1 %v1090_v16, %s1382_s0 }
0x178b   :  { %1134 = vperm.xlu1 %1278, %v1132_v2  }
0x178f   :  { %v1100_v20 = vpop.permute.xlu1 %1099  ;;  %1165 = vrot.lane.b32.xlu1 %v1130_v19, %s1392_s25 }
0x1790   :  { %vm1101_vm1 = vcmp.eq.s32.totalorder %v1100_v20, 1 }
0x1791   :  { %v1102_v22 = vsel %vm1101_vm1, %v1635_v45, 0.0  ;;  %v127_v45 = vsel %vm110_vm3, 8, %v1391_v30 }
0x1792   :  { %1153 = vrot.lane.b32.xlu0 %v1102_v22, %s1392_s25  ;;  %vm128_vm7 = vcmp.gt.s32.totalorder %v1581_v52, %v127_v45 }
0x1793   :  { %v1114_v42 = vpop.permute.xlu1 %1113  ;;  %1169 = vrot.lane.b32.xlu1 %v1144_v23, %s1386_s1 }
0x1794   :  { %vm1115_vm4 = vcmp.eq.s32.totalorder %v1114_v42, 1 }
0x1795   :  { %v1116_v0 = vsel %vm1115_vm4, %v1723_v29, 0.0 }
0x1796   :  { %1157 = vrot.lane.b32.xlu0 %v1116_v0, %s1386_s1 }
0x1797   :  { %v1121_v24 = vpop.permute.xlu1 %1120 }
0x1798   :  { %vm1122_vm5 = vcmp.eq.s32.totalorder %v1121_v24, 1 }
0x1799   :  { %v1123_v49 = vsel %vm1122_vm5, %v1768_v58, 0.0  ;;  %v1107_v58 = vpop.permute.xlu0 %1106 }
0x179a   :  { %1161 = vrot.lane.b32.xlu0 %v1123_v49, %s1382_s0  ;;  %vm1108_vm3 = vcmp.eq.s32.totalorder %v1107_v58, 1 }
0x179b   :  { %v1109_v61 = vsel %vm1108_vm3, %v1679_v36, 0.0 }
0x17f9   :  { %v1093_v26 = vpop.permute.xlu1 %1092 }
0x17fa   :  { %v1095_v29 = vsel %vm128_vm7, %v1093_v26, %v1874_v40 }
0x17fb   :  { %1198 = vrot.lane.b32.xlu0 %v1095_v29, %s1392_s25  ;;  %1196 = vst.msk [vmem:[#allocation5] sm:$0x3] %vm1195_vm6, %v1095_v29  ;;  %v1151_v55 = vsel %vm1150_vm8, %v1095_v29, 0.0 }
0x17fc   :  { %1173 = vrot.lane.b32.xlu1 %v1151_v55, %s1382_s0 }
0x1804   :  { %v1154_v43 = vpop.permute.xlu0 %1153 }
0x1805   :  { %v1176_v1 = vsel %vm129_vm0, %v1154_v43, %v1109_v61 }
0x1806   :  { %v1135_v59 = vpop.permute.xlu1 %1134 }
0x1807   :  { %vm1136_vm9 = vcmp.eq.s32.totalorder %v1135_v59, 1 }
0x1808   :  { %v1158_v60 = vpop.permute.xlu0 %1157  ;;  %v1137_v62 = vsel %vm1136_vm9, %v1856_v21, 0.0 }
0x1809   :  { %v1178_v31 = vsel %vm1177_vm10, %v1176_v1, %v1158_v60 }
0x180a   :  { %v1166_v28 = vpop.permute.xlu1 %1165 }
0x180b   :  { %v1180_v63 = vsel %vm129_vm0, %v1166_v28, %v1137_v62 }
0x180c   :  { %v1162_v30 = vpop.permute.xlu0 %1161 }
0x180d   :  { %v1179_v50 = vsel %vm131_vm2, %v1178_v31, %v1162_v30 }
0x180e   :  { %v1170_v52 = vpop.permute.xlu1 %1169 }
0x180f   :  { %v1181_v32 = vsel %vm1177_vm10, %v1180_v63, %v1170_v52 }
0x186d   :  { %v1199_v27 = vpop.permute.xlu0 %1198 }
0x186e   :  { %1202 = vst.msk [vmem:[#allocation5 + $0x2] sm:$0x3] %vm1195_vm6, %v1199_v27  ;;  %v1174_v33 = vpop.permute.xlu1 %1173 }
0x186f   :  { %v1182_v34 = vsel %vm131_vm2, %v1181_v32, %v1174_v33 }
0x1870   :  { %1364 = shalt.err (!%p1361_p9)
}
0x1871   :  { %s1394_s29 = smov 2   ;;  %v1185_v36 = vcombine.low %v1179_v50, %v1182_v34 }
0x1872   :  { %1216 = dma.vmem_to_hbm [thread:$0]  %s1211_s27, 64, %s1935_s4, [#allocation4], %s1386_s1, %s1386_s1, %s1394_s29  }
0x1873   :  { %1250 = vst.sshfl [vmem:[%s1934_s3] sm:$0x33 pattern:$0x76325410] %v1185_v36 }
0x1874   :  { %1375 = dma.done.wait [#allocation4], 64  }
0x1875   :  { %1376 = vsyncadd [#allocation4], 4294967232 }
0x1876   :  { %1222 = vsyncpa [#allocation3], 1 }
0x1877   :  { %1223 = vsyncpa [#allocation4], 1 }

</bundles_post_ra>
